<compile_context>
chip_gen: v6e
topology: v6e:2x2x1
jax: 0.10.0
libtpu: 0.0.40
codegen_flags: <defaults>
</compile_context>

<pallas_src>
import functools

import jax
import jax.numpy as jnp
from jax import lax
from jax.experimental import pallas as pl
from jax.experimental.pallas import tpu as pltpu


_NEG_BIG = -1e30  # finite "minus infinity": avoids inf-inf NaN in the running-max update


def _mil_attention_kernel(
    # inputs
    h_ref, w1_ref, b1_ref, wab_ref, bab_ref, wc_ref, bc_ref,
    # outputs (m/l/acc blocks stay VMEM-resident across the tile axis -> accumulators)
    a_raw_ref, m_ref, l_ref, acc_ref,
    *, n_instances, tile_n, tiles_per_split, num_tiles, d_dim,
    mask_rows, skip_oob_tiles):
  c = pl.program_id(0)          # split index ("parallel"; one per TensorCore on v7x)
  t = pl.program_id(1)          # instance-tile index within the split ("arbitrary")
  tile_idx = c * tiles_per_split + t

  @pl.when(t == 0)
  def _init():
    m_ref[...] = jnp.full_like(m_ref, _NEG_BIG)
    l_ref[...] = jnp.zeros_like(l_ref)
    acc_ref[...] = jnp.zeros_like(acc_ref)

  def _compute():
    cdt = w1_ref.dtype  # MXU compute dtype (bf16 or f32); accumulation stays f32

    # fc: Linear(L -> H) + ReLU, f32 accumulation on the MXU.
    h1 = jnp.dot(h_ref[...], w1_ref[...],
                 preferred_element_type=jnp.float32) + b1_ref[...]
    h1 = jnp.maximum(h1, 0.0)                                        # (tile_n, H) f32

    base = tile_idx * tile_n
    if mask_rows:
      # Last valid tile is partial: zero padded/garbage rows so they cannot inject
      # NaN into the pooling matmul (0 * NaN = NaN on the MXU).  Statically skipped
      # when the bag divides evenly into tiles.
      row_id = base + lax.broadcasted_iota(jnp.int32, (tile_n, 1), 0)
      h1 = jnp.where(row_id < n_instances, h1, 0.0)
    h1c = h1.astype(cdt)

    # Gated attention with Wa|Wb fused into one (H, 2D) weight: one MXU weight-push /
    # fill-drain chain per tile and better N-fill on the 256-wide v6e/v7x MXU.
    pre = jnp.dot(h1c, wab_ref[...],
                  preferred_element_type=jnp.float32) + bab_ref[...]
    ab = jnp.tanh(pre[:, :d_dim]) * jax.nn.sigmoid(pre[:, d_dim:])   # (tile_n, D) f32

    # attention_c: Linear(D -> 1) as a trans-B dot so the per-instance scores come out
    # lane-dense as a (1, tile_n) row (q@k^T-style contraction; no materialized
    # (tile_n, D) transpose).  bc is a scalar read from SMEM.
    scores = lax.dot_general(wc_ref[...], ab, (((1,), (1,)), ((), ())),
                             preferred_element_type=jnp.float32) + bc_ref[0, 0]
    a_raw_ref[...] = scores            # finite even for padded cols (rows zeroed above)

    # Keep padded columns out of the softmax statistics.
    col_id = base + lax.broadcasted_iota(jnp.int32, (1, tile_n), 1)
    scores = jnp.where(col_id < n_instances, scores, _NEG_BIG)

    # Online softmax over instances + MXU pooling of the unnormalized weighted sum.
    m_prev = m_ref[0]                                                    # (1, 1)
    m_new = jnp.maximum(m_prev, jnp.max(scores, axis=-1, keepdims=True))
    alpha = jnp.exp(m_prev - m_new)
    p = jnp.exp(scores - m_new)                                          # (1, tile_n)
    l_ref[0] = alpha * l_ref[0] + jnp.sum(p, axis=-1, keepdims=True)
    acc_ref[0] = alpha * acc_ref[0] + jnp.dot(
        p.astype(cdt), h1c, preferred_element_type=jnp.float32)          # (1, H)
    m_ref[0] = m_new

  if skip_oob_tiles:
    # Padded tail tiles of the last split: skip all compute.  Their h DMA reads a
    # clamped (valid) block and their a_raw block is sliced off by the wrapper.
    pl.when(tile_idx < num_tiles)(_compute)
  else:
    _compute()


def _round_up(x, m):
  return ((x + m - 1) // m) * m


def _derive_vmem_limit_bytes(tile_n, l_dim, h_dim, d_dim, cdt_size, phys_vmem):
  """Size the scoped-VMEM limit from the actual tiling instead of a fixed constant."""
  f32 = 4
  resident_io = 2 * (                       # Pallas double-buffers every operand
      tile_n * l_dim * cdt_size             # streamed h tile
      + l_dim * h_dim * cdt_size            # W1
      + h_dim * (2 * d_dim) * cdt_size      # Wa|Wb fused
      + (h_dim + 3 * d_dim) * f32           # b1, ba|bb, Wc
      + tile_n * f32                        # A_raw tile
      + (2 + h_dim) * f32)                  # m, l, acc partial blocks
  intermediates = tile_n * (2 * h_dim + 4 * d_dim) * f32  # h1/h1c + pre/a/b/ab (generous)
  limit = resident_io + intermediates + (8 << 20)          # compiler headroom
  return int(min(max(limit, 32 << 20), int(phys_vmem * 0.9)))


@functools.partial(jax.jit,
                   static_argnames=("tile_n", "compute_dtype", "return_features"))
def mil_attention_fc_forward(h, params, *, tile_n=None,
                             compute_dtype=jnp.bfloat16, return_features=False):
  """Pallas forward of MIL_Attention_fc: returns (logits, Y_prob, Y_hat, A_raw, results)."""
  n, l_dim = h.shape
  h_dim = params["w1"].shape[1]
  d_dim = params["wa"].shape[1]

  cdt = jnp.dtype(compute_dtype)
  cdt_size = cdt.itemsize

  # Physical VMEM of this generation (v5e/v6e: 128 MiB, v7x: 64 MiB per TensorCore).
  try:
    phys_vmem = int(pltpu.get_tpu_info().vmem_capacity_bytes)
  except Exception:
    phys_vmem = 64 << 20  # conservative fallback (v7x size)

  # Instance tile: multiple of 128 (lane-dense A_raw rows, unmasked MXU tiles), capped
  # near the bag size.  Auto default: 1024 on 128-MiB chips (v5e/v6e; 2048 also fits
  # there in f32), 512 on the 64-MiB-per-TC v7x.
  if tile_n is None:
    tile_n = 1024 if phys_vmem >= (96 << 20) else 512
  tile_n = max(128, _round_up(min(tile_n, _round_up(n, 128)), 128))

  num_tiles = pl.cdiv(n, tile_n)
  # Split the bag in two: the leading "parallel" grid axis is sharded across the 2
  # TensorCores on v7x (~2x for large bags); on single-TC v5e/v6e the two splits simply
  # run back-to-back (fully padded tail tiles are skipped in-kernel, so no wasted MXU work).
  num_splits = min(2, num_tiles)
  tiles_per_split = pl.cdiv(num_tiles, num_splits)
  num_tiles_padded = num_splits * tiles_per_split
  n_pad = num_tiles_padded * tile_n
  mask_rows = (n % tile_n) != 0
  skip_oob_tiles = num_tiles_padded != num_tiles
  nt_last = num_tiles - 1

  vmem_limit = _derive_vmem_limit_bytes(tile_n, l_dim, h_dim, d_dim, cdt_size, phys_vmem)

  # Large streamed / matmul operands in the compute dtype.  bf16 is recommended on ALL
  # of v5e/v6e/v7x (halves the h stream; v5e's MXU runs f32 as slow multi-pass bf16).
  # Accumulation, softmax statistics, biases and the D->1 / classifier weights stay f32.
  h_in = h.astype(cdt)
  w1 = params["w1"].astype(cdt)
  wab = jnp.concatenate([params["wa"], params["wb"]], axis=1).astype(cdt)  # (H, 2D)
  bab = jnp.concatenate([params["ba"], params["bb"]], axis=1)              # (1, 2D) f32
  b1, wc, bc = params["b1"], params["wc"], params["bc"]

  const = lambda shape: pl.BlockSpec(shape, lambda c, t: (0, 0))  # VMEM-resident weights
  # TODO(synk): on v7x, pipeline_mode=pl.Buffered(1) on these constant weight specs would
  # reclaim their second buffer (~W1-sized) from the 64 MiB budget.

  kernel = functools.partial(
      _mil_attention_kernel, n_instances=n, tile_n=tile_n,
      tiles_per_split=tiles_per_split, num_tiles=num_tiles, d_dim=d_dim,
      mask_rows=mask_rows, skip_oob_tiles=skip_oob_tiles)

  a_raw_pad, m_part, l_part, acc_part = pl.pallas_call(
      kernel,
      out_shape=(
          jax.ShapeDtypeStruct((1, n_pad), jnp.float32),              # A_raw (lane-dense)
          jax.ShapeDtypeStruct((num_splits, 1, 1), jnp.float32),      # per-split max m
          jax.ShapeDtypeStruct((num_splits, 1, 1), jnp.float32),      # per-split denom l
          jax.ShapeDtypeStruct((num_splits, 1, h_dim), jnp.float32),  # per-split acc M
      ),
      grid_spec=pltpu.PrefetchScalarGridSpec(
          num_scalar_prefetch=0,
          grid=(num_splits, tiles_per_split),
          in_specs=[
              # h streams tile-by-tile; the block index is clamped so padded tail tiles
              # of the last split never issue an out-of-bounds DMA.
              pl.BlockSpec(
                  (tile_n, l_dim),
                  lambda c, t: (jnp.minimum(c * tiles_per_split + t, nt_last), 0)),
              const((l_dim, h_dim)),          # W1
              const((1, h_dim)),              # b1
              const((h_dim, 2 * d_dim)),      # Wa | Wb fused
              const((1, 2 * d_dim)),          # ba | bb fused
              const((1, d_dim)),              # Wc (row form of Linear(D, 1).weight)
              pl.BlockSpec(memory_space=pltpu.MemorySpace.SMEM),  # bc scalar in SMEM
          ],
          out_specs=(
              pl.BlockSpec((1, tile_n), lambda c, t: (0, c * tiles_per_split + t)),
              pl.BlockSpec((1, 1, 1), lambda c, t: (c, 0, 0)),
              pl.BlockSpec((1, 1, 1), lambda c, t: (c, 0, 0)),
              pl.BlockSpec((1, 1, h_dim), lambda c, t: (c, 0, 0)),
          ),
      ),
      compiler_params=pltpu.CompilerParams(
          # Online-softmax accumulators live in per-split output blocks, so the tile axis
          # is "arbitrary"; the split axis is "parallel" (megacore-sharded on v7x).
          dimension_semantics=("parallel", "arbitrary"),
          vmem_limit_bytes=vmem_limit,
      ),
  )(h_in, w1, b1, wab, bab, wc, bc)

  # Flash-style merge of the per-split partials + classifier + class softmax.
  # O(H) work done once; exact division (no approx reciprocal) keeps full f32 accuracy.
  m_p = m_part[:, 0, :]                                      # (S, 1)
  l_p = l_part[:, 0, :]                                      # (S, 1)
  acc_p = acc_part[:, 0, :]                                  # (S, H)
  m_glob = jnp.max(m_p, axis=0, keepdims=True)               # (1, 1)
  scale = jnp.exp(m_p - m_glob)                              # (S, 1)
  l_glob = jnp.sum(l_p * scale, axis=0, keepdims=True)       # (1, 1)
  m_pool = jnp.sum(acc_p * scale, axis=0, keepdims=True) / l_glob    # (1, H)

  logits = m_pool @ params["wcls"] + params["bcls"]          # (1, C)
  y_prob = jax.nn.softmax(logits, axis=1)
  y_hat = jnp.argmax(logits, axis=1, keepdims=True)          # torch.topk(logits, 1)[1]
  a_raw = a_raw_pad[:, :n]                                   # == torch.transpose(A, 1, 0)

  results = {"features": m_pool} if return_features else {}
  # TODO(synk): the torch `attention_only` early-return flag is not exposed; A_raw is
  # always returned instead.
  return logits, y_prob, y_hat, a_raw, results


def init_params(key, l_dim, h_dim, d_dim, c_dim):
  ks = jax.random.split(key, 6)
  s = 0.05
  return {
      "w1":   s * jax.random.normal(ks[0], (l_dim, h_dim), jnp.float32),
      "b1":   jnp.zeros((1, h_dim), jnp.float32),
      "wa":   s * jax.random.normal(ks[1], (h_dim, d_dim), jnp.float32),
      "ba":   jnp.zeros((1, d_dim), jnp.float32),
      "wb":   s * jax.random.normal(ks[2], (h_dim, d_dim), jnp.float32),
      "bb":   jnp.zeros((1, d_dim), jnp.float32),
      "wc":   s * jax.random.normal(ks[3], (1, d_dim), jnp.float32),   # Linear(D, 1).weight
      "bc":   jnp.full((1, 1), 0.01, jnp.float32),                     # Linear(D, 1).bias
      "wcls": s * jax.random.normal(ks[4], (h_dim, c_dim), jnp.float32),
      "bcls": 0.01 * jax.random.normal(ks[5], (1, c_dim), jnp.float32),
  }


def reference_forward(h, p):
  h1 = jnp.maximum(h @ p["w1"] + p["b1"], 0.0)
  a = jnp.tanh(h1 @ p["wa"] + p["ba"])
  b = jax.nn.sigmoid(h1 @ p["wb"] + p["bb"])
  scores = (a * b) @ p["wc"].T + p["bc"]            # (N, 1)
  a_raw = scores.T                                  # (1, N)
  attn = jax.nn.softmax(a_raw, axis=1)
  m_pool = attn @ h1                                # (1, H)
  logits = m_pool @ p["wcls"] + p["bcls"]
  y_prob = jax.nn.softmax(logits, axis=1)
  y_hat = jnp.argmax(logits, axis=1, keepdims=True)
  return logits, y_prob, y_hat, a_raw


if __name__ == "__main__":
  # Small shapes consistent with the module structure
  # (original 'small': L=1024, H=512, D=256, n_classes=2 -> scaled to L=256, H=128, D=128).
  N, L, H, D, C = 300, 256, 128, 128, 2

  key = jax.random.PRNGKey(0)
  k_h, k_p = jax.random.split(key)
  h = jax.random.normal(k_h, (N, L), jnp.float32)
  params = init_params(k_p, L, H, D, C)

  r_logits, r_prob, r_yhat, r_araw = reference_forward(h, params)

  # f32 path, forced small tile: 3 real tiles -> 2 splits x 2 tiles
  # (partial tile masked, one fully padded tile skipped in-kernel).
  logits, y_prob, y_hat, a_raw, _ = mil_attention_fc_forward(
      h, params, tile_n=128, compute_dtype=jnp.float32)
  jax.block_until_ready((logits, y_prob, y_hat, a_raw))
  assert a_raw.shape == (1, N), a_raw.shape
  assert jnp.allclose(a_raw, r_araw, atol=2e-3, rtol=2e-3), "A_raw mismatch"
  assert jnp.allclose(logits, r_logits, atol=2e-3, rtol=2e-3), "logits mismatch"
  assert jnp.allclose(y_prob, r_prob, atol=2e-3, rtol=2e-3), "Y_prob mismatch"
  srt = jnp.sort(r_logits[0])
  if float(srt[-1] - srt[-2]) > 5e-3:   # only check argmax when the top-2 are not a near-tie
    assert jnp.array_equal(y_hat, r_yhat), "Y_hat mismatch"

  # Default path: auto tile size (per-generation VMEM budget) + bf16 compute, the
  # recommended configuration on v5e/v6e/v7x; accumulation / softmax stats stay f32.
  bf_logits, bf_prob, _, bf_araw, _ = mil_attention_fc_forward(h, params)
  jax.block_until_ready((bf_logits, bf_prob, bf_araw))
  assert jnp.allclose(bf_logits, r_logits, atol=5e-2, rtol=5e-2), "bf16 logits mismatch"
  assert jnp.allclose(bf_araw, r_araw, atol=5e-2, rtol=5e-2), "bf16 A_raw mismatch"

  # bf16 + multi-tile + 2-split path.
  mt_logits, mt_prob, _, mt_araw, _ = mil_attention_fc_forward(
      h, params, tile_n=128, compute_dtype=jnp.bfloat16)
  jax.block_until_ready((mt_logits, mt_prob, mt_araw))
  assert jnp.allclose(mt_logits, r_logits, atol=5e-2, rtol=5e-2), "bf16 tiled logits mismatch"
  assert jnp.allclose(mt_araw, r_araw, atol=5e-2, rtol=5e-2), "bf16 tiled A_raw mismatch"

  print("KERNEL_OK")
</pallas_src>

<mosaic_0001>
module attributes {stable_mosaic.version = 11 : i64} {
  func.func @_mil_attention_kernel(%arg0: i32, %arg1: i32, %arg2: memref<128x256xf32, #tpu.memory_space<vmem>>, %arg3: memref<256x128xf32, #tpu.memory_space<vmem>>, %arg4: memref<1x128xf32, #tpu.memory_space<vmem>>, %arg5: memref<128x256xf32, #tpu.memory_space<vmem>>, %arg6: memref<1x256xf32, #tpu.memory_space<vmem>>, %arg7: memref<1x128xf32, #tpu.memory_space<vmem>>, %arg8: memref<1x1xf32, #tpu.memory_space<smem>>, %arg9: memref<1x128xf32, #tpu.memory_space<vmem>>, %arg10: memref<1x1x1xf32, #tpu.memory_space<vmem>>, %arg11: memref<1x1x1xf32, #tpu.memory_space<vmem>>, %arg12: memref<1x1x128xf32, #tpu.memory_space<vmem>>) attributes {dimension_semantics = [#tpu.dimension_semantics<parallel>, #tpu.dimension_semantics<arbitrary>], iteration_bounds = array<i64: 2, 2>, scalar_prefetch = 0 : i64, scratch_operands = 0 : i64, tpu.core_type = #tpu.core_type<tc>, window_params = [{transform_indices = @transform_0, window_bounds = array<i64: 128, 256>}, {pipeline_mode = #tpu.pipeline_mode<synchronous>, transform_indices = @transform_1, window_bounds = array<i64: 256, 128>}, {pipeline_mode = #tpu.pipeline_mode<synchronous>, transform_indices = @transform_2, window_bounds = array<i64: 1, 128>}, {pipeline_mode = #tpu.pipeline_mode<synchronous>, transform_indices = @transform_3, window_bounds = array<i64: 128, 256>}, {pipeline_mode = #tpu.pipeline_mode<synchronous>, transform_indices = @transform_4, window_bounds = array<i64: 1, 256>}, {pipeline_mode = #tpu.pipeline_mode<synchronous>, transform_indices = @transform_5, window_bounds = array<i64: 1, 128>}, {transform_indices = @transform_6, window_bounds = array<i64: 1, 1>}, {transform_indices = @transform_7, window_bounds = array<i64: 1, 128>}, {transform_indices = @transform_8, window_bounds = array<i64: 1, 1, 1>}, {transform_indices = @transform_9, window_bounds = array<i64: 1, 1, 1>}, {transform_indices = @transform_10, window_bounds = array<i64: 1, 1, 128>}]} {
    %c2_i32 = arith.constant 2 : i32
    %0 = arith.muli %arg0, %c2_i32 : i32
    %1 = arith.addi %0, %arg1 : i32
    %c0_i32 = arith.constant 0 : i32
    %2 = arith.cmpi eq, %arg1, %c0_i32 : i32
    %3 = arith.extui %2 : i1 to i32
    %c0_i32_0 = arith.constant 0 : i32
    %4 = arith.cmpi ne, %3, %c0_i32_0 : i32
    scf.if %4 {
      %cst = arith.constant -1.000000e+30 : f32
      %8 = vector.broadcast %cst : f32 to vector<1x1x1xf32>
      %c0 = arith.constant 0 : index
      %c0_2 = arith.constant 0 : index
      %c0_3 = arith.constant 0 : index
      %9 = vector.load %arg10[%c0, %c0_2, %c0_3] : memref<1x1x1xf32, #tpu.memory_space<vmem>>, vector<1x1x1xf32>
      tpu.vector_store %arg10[%c0, %c0_2, %c0_3], %8 {strides = array<i32>} : memref<1x1x1xf32, #tpu.memory_space<vmem>>, vector<1x1x1xf32>,
      %cst_4 = arith.constant 0.000000e+00 : f32
      %10 = vector.broadcast %cst_4 : f32 to vector<1x1x1xf32>
      %c0_5 = arith.constant 0 : index
      %c0_6 = arith.constant 0 : index
      %c0_7 = arith.constant 0 : index
      %11 = vector.load %arg11[%c0_5, %c0_6, %c0_7] : memref<1x1x1xf32, #tpu.memory_space<vmem>>, vector<1x1x1xf32>
      tpu.vector_store %arg11[%c0_5, %c0_6, %c0_7], %10 {strides = array<i32>} : memref<1x1x1xf32, #tpu.memory_space<vmem>>, vector<1x1x1xf32>,
      %cst_8 = arith.constant 0.000000e+00 : f32
      %12 = vector.broadcast %cst_8 : f32 to vector<1x1x128xf32>
      %c0_9 = arith.constant 0 : index
      %c0_10 = arith.constant 0 : index
      %c0_11 = arith.constant 0 : index
      %13 = vector.load %arg12[%c0_9, %c0_10, %c0_11] : memref<1x1x128xf32, #tpu.memory_space<vmem>>, vector<1x1x128xf32>
      tpu.vector_store %arg12[%c0_9, %c0_10, %c0_11], %12 {strides = array<i32>} : memref<1x1x128xf32, #tpu.memory_space<vmem>>, vector<1x1x128xf32>,
    } else {
    }
    %c3_i32 = arith.constant 3 : i32
    %5 = arith.cmpi slt, %1, %c3_i32 : i32
    %6 = arith.extui %5 : i1 to i32
    %c0_i32_1 = arith.constant 0 : i32
    %7 = arith.cmpi ne, %6, %c0_i32_1 : i32
    scf.if %7 {
      %c0 = arith.constant 0 : index
      %c0_2 = arith.constant 0 : index
      %8 = vector.load %arg2[%c0, %c0_2] : memref<128x256xf32, #tpu.memory_space<vmem>>, vector<128x256xf32>
      %c0_3 = arith.constant 0 : index
      %c0_4 = arith.constant 0 : index
      %9 = vector.load %arg3[%c0_3, %c0_4] : memref<256x128xf32, #tpu.memory_space<vmem>>, vector<256x128xf32>
      %cst = arith.constant dense<0.000000e+00> : vector<128x128xf32>
      %10 = tpu.matmul %8, %9, %cst {dimension_numbers = #tpu.dot_dimension_numbers<[1], [0], [0], [1], [0, 0, 1, 1], [], []>} : vector<128x256xf32>, vector<256x128xf32>, vector<128x128xf32> -> vector<128x128xf32>
      %c0_5 = arith.constant 0 : index
      %c0_6 = arith.constant 0 : index
      %11 = vector.load %arg4[%c0_5, %c0_6] : memref<1x128xf32, #tpu.memory_space<vmem>>, vector<1x128xf32>
      %12 = vector.broadcast %11 : vector<1x128xf32> to vector<128x128xf32>
      %13 = arith.addf %10, %12 : vector<128x128xf32>
      %cst_7 = arith.constant 0.000000e+00 : f32
      %14 = vector.broadcast %cst_7 : f32 to vector<128x128xf32>
      %15 = arith.maximumf %13, %14 : vector<128x128xf32>
      %c128_i32 = arith.constant 128 : i32
      %16 = arith.muli %1, %c128_i32 : i32
      %17 = tpu.iota {dimensions = array<i32: 0>} : vector<128x1xi32>
      %18 = vector.broadcast %16 : i32 to vector<128x1xi32>
      %19 = arith.addi %18, %17 : vector<128x1xi32>
      %c300_i32 = arith.constant 300 : i32
      %20 = vector.broadcast %c300_i32 : i32 to vector<128x1xi32>
      %21 = arith.cmpi slt, %19, %20 : vector<128x1xi32>
      %cst_8 = arith.constant 0.000000e+00 : f32
      %22 = vector.shape_cast %21 : vector<128x1xi1> to vector<128x1xi1>
      %23 = vector.broadcast %22 : vector<128x1xi1> to vector<128x128xi1>
      %24 = vector.broadcast %cst_8 : f32 to vector<128x128xf32>
      %25 = arith.select %23, %15, %24 : vector<128x128xi1>, vector<128x128xf32>
      %c0_9 = arith.constant 0 : index
      %c0_10 = arith.constant 0 : index
      %26 = vector.load %arg5[%c0_9, %c0_10] : memref<128x256xf32, #tpu.memory_space<vmem>>, vector<128x256xf32>
      %cst_11 = arith.constant dense<0.000000e+00> : vector<128x256xf32>
      %27 = tpu.matmul %25, %26, %cst_11 {dimension_numbers = #tpu.dot_dimension_numbers<[1], [0], [0], [1], [0, 0, 1, 1], [], []>} : vector<128x128xf32>, vector<128x256xf32>, vector<128x256xf32> -> vector<128x256xf32>
      %c0_12 = arith.constant 0 : index
      %c0_13 = arith.constant 0 : index
      %28 = vector.load %arg6[%c0_12, %c0_13] : memref<1x256xf32, #tpu.memory_space<vmem>>, vector<1x256xf32>
      %29 = vector.broadcast %28 : vector<1x256xf32> to vector<128x256xf32>
      %30 = arith.addf %27, %29 : vector<128x256xf32>
      %31 = vector.extract_strided_slice %30 {offsets = [0, 0], sizes = [128, 128], strides = [1, 1]} : vector<128x256xf32> to vector<128x128xf32>
      %32 = math.tanh %31 : vector<128x128xf32>
      %33 = vector.extract_strided_slice %30 {offsets = [0, 128], sizes = [128, 128], strides = [1, 1]} : vector<128x256xf32> to vector<128x128xf32>
      %34 = arith.negf %33 : vector<128x128xf32>
      %35 = math.exp %34 : vector<128x128xf32>
      %cst_14 = arith.constant 1.000000e+00 : f32
      %36 = vector.broadcast %cst_14 : f32 to vector<128x128xf32>
      %37 = arith.addf %36, %35 : vector<128x128xf32>
      %38 = arith.divf %36, %37 : vector<128x128xf32>
      %39 = arith.mulf %32, %38 : vector<128x128xf32>
      %c0_15 = arith.constant 0 : index
      %c0_16 = arith.constant 0 : index
      %40 = vector.load %arg7[%c0_15, %c0_16] : memref<1x128xf32, #tpu.memory_space<vmem>>, vector<1x128xf32>
      %cst_17 = arith.constant dense<0.000000e+00> : vector<1x128xf32>
      %41 = tpu.matmul %40, %39, %cst_17 {dimension_numbers = #tpu.dot_dimension_numbers<[1], [1], [0], [0], [0, 0, 1, 0], [], []>} : vector<1x128xf32>, vector<128x128xf32>, vector<1x128xf32> -> vector<1x128xf32>
      %c0_18 = arith.constant 0 : index
      %c0_19 = arith.constant 0 : index
      %42 = memref.load %arg8[%c0_18, %c0_19] : memref<1x1xf32, #tpu.memory_space<smem>>
      %43 = vector.broadcast %42 : f32 to vector<1x128xf32>
      %44 = arith.addf %41, %43 : vector<1x128xf32>
      %c0_20 = arith.constant 0 : index
      %c0_21 = arith.constant 0 : index
      %45 = vector.load %arg9[%c0_20, %c0_21] : memref<1x128xf32, #tpu.memory_space<vmem>>, vector<1x128xf32>
      tpu.vector_store %arg9[%c0_20, %c0_21], %44 {strides = array<i32>} : memref<1x128xf32, #tpu.memory_space<vmem>>, vector<1x128xf32>,
      %46 = tpu.iota {dimensions = array<i32: 1>} : vector<1x128xi32>
      %47 = vector.broadcast %16 : i32 to vector<1x128xi32>
      %48 = arith.addi %47, %46 : vector<1x128xi32>
      %c300_i32_22 = arith.constant 300 : i32
      %49 = vector.broadcast %c300_i32_22 : i32 to vector<1x128xi32>
      %50 = arith.cmpi slt, %48, %49 : vector<1x128xi32>
      %cst_23 = arith.constant -1.000000e+30 : f32
      %51 = vector.broadcast %cst_23 : f32 to vector<1x128xf32>
      %52 = arith.select %50, %44, %51 : vector<1x128xi1>, vector<1x128xf32>
      %c0_24 = arith.constant 0 : index
      %c0_25 = arith.constant 0 : index
      %c0_26 = arith.constant 0 : index
      %53 = vector.load %arg10[%c0_24, %c0_25, %c0_26] : memref<1x1x1xf32, #tpu.memory_space<vmem>>, vector<1x1x1xf32>
      %54 = vector.shape_cast %53 : vector<1x1x1xf32> to vector<1x1xf32>
      %cst_27 = arith.constant dense<0xFF800000> : vector<1xf32>
      %55 = vector.multi_reduction <maximumf>, %52, %cst_27 [1] : vector<1x128xf32> to vector<1xf32>
      %56 = vector.shape_cast %55 : vector<1xf32> to vector<1x1xf32>
      %57 = arith.maximumf %54, %56 : vector<1x1xf32>
      %58 = arith.subf %54, %57 : vector<1x1xf32>
      %59 = math.exp %58 : vector<1x1xf32>
      %60 = vector.broadcast %57 : vector<1x1xf32> to vector<1x128xf32>
      %61 = arith.subf %52, %60 : vector<1x128xf32>
      %62 = math.exp %61 : vector<1x128xf32>
      %c0_28 = arith.constant 0 : index
      %c0_29 = arith.constant 0 : index
      %c0_30 = arith.constant 0 : index
      %63 = vector.load %arg11[%c0_28, %c0_29, %c0_30] : memref<1x1x1xf32, #tpu.memory_space<vmem>>, vector<1x1x1xf32>
      %64 = vector.shape_cast %63 : vector<1x1x1xf32> to vector<1x1xf32>
      %65 = arith.mulf %59, %64 : vector<1x1xf32>
      %cst_31 = arith.constant dense<0.000000e+00> : vector<1xf32>
      %66 = vector.multi_reduction <add>, %62, %cst_31 [1] : vector<1x128xf32> to vector<1xf32>
      %67 = vector.shape_cast %66 : vector<1xf32> to vector<1x1xf32>
      %68 = arith.addf %65, %67 : vector<1x1xf32>
      %c0_32 = arith.constant 0 : index
      %c0_33 = arith.constant 0 : index
      %c0_34 = arith.constant 0 : index
      %69 = vector.load %arg11[%c0_32, %c0_33, %c0_34] : memref<1x1x1xf32, #tpu.memory_space<vmem>>, vector<1x1x1xf32>
      %70 = vector.shape_cast %69 : vector<1x1x1xf32> to vector<1x1xf32>
      %71 = vector.shape_cast %68 : vector<1x1xf32> to vector<1x1x1xf32>
      tpu.vector_store %arg11[%c0_32, %c0_33, %c0_34], %71 {strides = array<i32>} : memref<1x1x1xf32, #tpu.memory_space<vmem>>, vector<1x1x1xf32>,
      %c0_35 = arith.constant 0 : index
      %c0_36 = arith.constant 0 : index
      %c0_37 = arith.constant 0 : index
      %72 = vector.load %arg12[%c0_35, %c0_36, %c0_37] : memref<1x1x128xf32, #tpu.memory_space<vmem>>, vector<1x1x128xf32>
      %73 = vector.shape_cast %72 : vector<1x1x128xf32> to vector<1x128xf32>
      %74 = vector.broadcast %59 : vector<1x1xf32> to vector<1x128xf32>
      %75 = arith.mulf %74, %73 : vector<1x128xf32>
      %cst_38 = arith.constant dense<0.000000e+00> : vector<1x128xf32>
      %76 = tpu.matmul %62, %25, %cst_38 {dimension_numbers = #tpu.dot_dimension_numbers<[1], [0], [0], [1], [0, 0, 1, 1], [], []>} : vector<1x128xf32>, vector<128x128xf32>, vector<1x128xf32> -> vector<1x128xf32>
      %77 = arith.addf %75, %76 : vector<1x128xf32>
      %c0_39 = arith.constant 0 : index
      %c0_40 = arith.constant 0 : index
      %c0_41 = arith.constant 0 : index
      %78 = vector.load %arg12[%c0_39, %c0_40, %c0_41] : memref<1x1x128xf32, #tpu.memory_space<vmem>>, vector<1x1x128xf32>
      %79 = vector.shape_cast %78 : vector<1x1x128xf32> to vector<1x128xf32>
      %80 = vector.shape_cast %77 : vector<1x128xf32> to vector<1x1x128xf32>
      tpu.vector_store %arg12[%c0_39, %c0_40, %c0_41], %80 {strides = array<i32>} : memref<1x1x128xf32, #tpu.memory_space<vmem>>, vector<1x1x128xf32>,
      %c0_42 = arith.constant 0 : index
      %c0_43 = arith.constant 0 : index
      %c0_44 = arith.constant 0 : index
      %81 = vector.load %arg10[%c0_42, %c0_43, %c0_44] : memref<1x1x1xf32, #tpu.memory_space<vmem>>, vector<1x1x1xf32>
      %82 = vector.shape_cast %81 : vector<1x1x1xf32> to vector<1x1xf32>
      %83 = vector.shape_cast %57 : vector<1x1xf32> to vector<1x1x1xf32>
      tpu.vector_store %arg10[%c0_42, %c0_43, %c0_44], %83 {strides = array<i32>} : memref<1x1x1xf32, #tpu.memory_space<vmem>>, vector<1x1x1xf32>,
    } else {
    }
    return
  }
  func.func @transform_0(%arg0: i32, %arg1: i32) -> (i32, i32) {
    %c2_i32 = arith.constant 2 : i32
    %0 = arith.muli %arg0, %c2_i32 : i32
    %1 = arith.addi %0, %arg1 : i32
    %c2_i32_0 = arith.constant 2 : i32
    %2 = arith.minsi %1, %c2_i32_0 : i32
    %c0_i32 = arith.constant 0 : i32
    %c0_i32_1 = arith.constant 0 : i32
    return %2, %c0_i32 : i32, i32
  }
  func.func @transform_1(%arg0: i32, %arg1: i32) -> (i32, i32) {
    %c0_i32 = arith.constant 0 : i32
    %c0_i32_0 = arith.constant 0 : i32
    %c0_i32_1 = arith.constant 0 : i32
    return %c0_i32, %c0_i32_0 : i32, i32
  }
  func.func @transform_2(%arg0: i32, %arg1: i32) -> (i32, i32) {
    %c0_i32 = arith.constant 0 : i32
    %c0_i32_0 = arith.constant 0 : i32
    %c0_i32_1 = arith.constant 0 : i32
    return %c0_i32, %c0_i32_0 : i32, i32
  }
  func.func @transform_3(%arg0: i32, %arg1: i32) -> (i32, i32) {
    %c0_i32 = arith.constant 0 : i32
    %c0_i32_0 = arith.constant 0 : i32
    %c0_i32_1 = arith.constant 0 : i32
    return %c0_i32, %c0_i32_0 : i32, i32
  }
  func.func @transform_4(%arg0: i32, %arg1: i32) -> (i32, i32) {
    %c0_i32 = arith.constant 0 : i32
    %c0_i32_0 = arith.constant 0 : i32
    %c0_i32_1 = arith.constant 0 : i32
    return %c0_i32, %c0_i32_0 : i32, i32
  }
  func.func @transform_5(%arg0: i32, %arg1: i32) -> (i32, i32) {
    %c0_i32 = arith.constant 0 : i32
    %c0_i32_0 = arith.constant 0 : i32
    %c0_i32_1 = arith.constant 0 : i32
    return %c0_i32, %c0_i32_0 : i32, i32
  }
  func.func @transform_6(%arg0: i32, %arg1: i32) -> (i32, i32) {
    %c0_i32 = arith.constant 0 : i32
    %c0_i32_0 = arith.constant 0 : i32
    %c0_i32_1 = arith.constant 0 : i32
    return %c0_i32, %c0_i32_0 : i32, i32
  }
  func.func @transform_7(%arg0: i32, %arg1: i32) -> (i32, i32) {
    %c2_i32 = arith.constant 2 : i32
    %0 = arith.muli %arg0, %c2_i32 : i32
    %1 = arith.addi %0, %arg1 : i32
    %c0_i32 = arith.constant 0 : i32
    %c0_i32_0 = arith.constant 0 : i32
    return %c0_i32, %1 : i32, i32
  }
  func.func @transform_8(%arg0: i32, %arg1: i32) -> (i32, i32, i32) {
    %c0_i32 = arith.constant 0 : i32
    %c0_i32_0 = arith.constant 0 : i32
    %c0_i32_1 = arith.constant 0 : i32
    return %arg0, %c0_i32, %c0_i32_0 : i32, i32, i32
  }
  func.func @transform_9(%arg0: i32, %arg1: i32) -> (i32, i32, i32) {
    %c0_i32 = arith.constant 0 : i32
    %c0_i32_0 = arith.constant 0 : i32
    %c0_i32_1 = arith.constant 0 : i32
    return %arg0, %c0_i32, %c0_i32_0 : i32, i32, i32
  }
  func.func @transform_10(%arg0: i32, %arg1: i32) -> (i32, i32, i32) {
    %c0_i32 = arith.constant 0 : i32
    %c0_i32_0 = arith.constant 0 : i32
    %c0_i32_1 = arith.constant 0 : i32
    return %arg0, %c0_i32, %c0_i32_0 : i32, i32, i32
  }
}

</mosaic_0001>

<bundles_post_ra>
// kernel: mil_attention_fc_forward.1
= control target key start
LH: loop header
LB: loop body
LE: loop exit
PB: predicated region body
PF: predicated region fallthrough
CT: control target
= control target key end

     0   :  { %s2842_s0 = inlined_call_operand.hbm [shape: f32[300,256], index: 0, kind: input, shape index: {}]   ;;  %s2843_s1 = inlined_call_operand.vmem [shape: f32[256,128], index: 1, kind: input, shape index: {}]   ;;  %s2844_s2 = inlined_call_operand.vmem [shape: f32[1,128], index: 2, kind: input, shape index: {}]   ;;  %s2845_s3 = inlined_call_operand.vmem [shape: f32[128,256], index: 3, kind: input, shape index: {}]   ;;  %s2846_s4 = inlined_call_operand.vmem [shape: f32[1,256], index: 4, kind: input, shape index: {}]   ;;  %s2847_s5 = inlined_call_operand.vmem [shape: f32[1,128], index: 5, kind: input, shape index: {}]   ;;  %s2848_s6 = inlined_call_operand.<no memory space> [shape: f32[1,1], index: 6, kind: input, shape index: {}]   ;;  %s2849_s7 = inlined_call_operand.vmem [shape: f32[1,512], index: 7, kind: output, shape index: {0}]   ;;  %s2850_s8 = inlined_call_operand.vmem [shape: f32[2,1,1], index: 8, kind: output, shape index: {1}]   ;;  %s2851_s9 = inlined_call_operand.vmem [shape: f32[2,1,1], index: 9, kind: output, shape index: {2}]   ;;  %s2852_s10 = inlined_call_operand.vmem [shape: f32[2,1,128], index: 10, kind: output, shape index: {3}]  }
   0x1   :  { %2856 = sst [smem:[#allocation9_spill]] %s2842_s0 }
   0x2   :  { %16 = sst [smem:[#allocation2]] %s2848_s6 }
   0x3   :  { %17 = vsyncpa [#allocation4], 0 }
   0x4   :  { %19 = vsyncpa [#allocation4 + $0x1], 0  ;;  %s2072_s15 = smov 0   ;;  %s2074_s16 = smov 0  }
   0x5   :  { %s2076_s17 = smov 0   ;;  %s2078_s18 = smov 0  }
   0x6   :  { %s2080_s19 = smov 0   ;;  %s2082_s20 = smov 0  }
   0x7   :  { %s2084_s21 = smov 0   ;;  %s2086_s22 = smov 0  }
   0x8 LB: > { %2857 = sst [smem:[#allocation6_spill]] %s2000_s21  ;;  %s34_s6 = sadd.s32 1, %s1996_s20  ;;  %s2004_s22 = sphi %s2086_s22, %s25_s22   ;;  %s2000_s21 = sphi %s2084_s21, %s2864_s21   ;;  %s1996_s20 = sphi %s2082_s20, %s2869_s20   ;;  %s1992_s19 = sphi %s2080_s19, %s2862_s19   ;;  %s1988_s18 = sphi %s2078_s18, %s2868_s18   ;;  %s1984_s17 = sphi %s2076_s17, %s2867_s17   ;;  %s1980_s16 = sphi %s2074_s16, %s2866_s16   ;;  %s1976_s15 = sphi %s2072_s15, %s2865_s15  }
   0x9   : > { %p35_p0 = scmp.ge.s32.totalorder %s34_s6, 2  ;;  %s37_s23 = sadd.s32 1, %s2000_s21 }
   0xa   : > { %s1475_s24 = sadd.s32 4294967295, %s2004_s22   ;;  %s1477_s25 = sshll.u32 %s2000_s21, 1 }
   0xb   : > { %s2871_s6 = smov (%p35_p0, %s34_s6), 0  ;;  %s2873_s23 = smov (!%p35_p0, %s37_s23), %s2000_s21 }
   0xc   : > { %2858 = sst [smem:[#allocation7_spill]] %s2871_s6  ;;  %s42_s26 = sadd.s32 %s1996_s20, %s1477_s25 }
   0xd   : > { %p59_p1 = scmp.ne.s32.totalorder %s1984_s17, %s1980_s16  ;;  %p39_p2 = scmp.ge.s32.totalorder %s2873_s23, 2 }
   0xe   : > { %p43_p3 = scmp.lt.s32.totalorder %s42_s26, 2  ;;  %p60_p4 = scmp.eq.s32.totalorder %s2004_s22, 0 }
   0xf   : > { %p65_p5 = scmp.ne.s32.totalorder %s1980_s16, %s1976_s15  ;;  %s2875_s23 = smov (%p39_p2, %s2873_s23), 0 }
  0x10   : > { %2859 = sst [smem:[#allocation8_spill]] %s2875_s23  ;;  %s2877_s26 = smov (!%p43_p3, %s42_s26), 2 }
  0x11   : > { %s1478_s27 = sshll.u32 %s2875_s23, 1  ;;  %p61_p6 = por %p60_p4, %p59_p1 }
  0x12   : > { %s46_s28 = sadd.s32 %s1478_s27, %s2871_s6  ;;  %p66_p7 = scmp.eq.s32.totalorder %s1475_s24, 0 }
  0x13   : > { %p47_p8 = scmp.lt.s32.totalorder %s46_s28, 2  ;;  %s52_s11 = sadd.s32 1, %s1984_s17 }
  0x14   : > { %p2128_p9 = por %p66_p7, %p65_p5  ;;  %p1482_p11 = scmp.ge.s32.totalorder %s2004_s22, 4 }
  0x15   : > { %s2879_s28 = smov (!%p47_p8, %s46_s28), 2 }
  0x16   : > { %s49_s30 = ssub.s32 %s2877_s26, %s2879_s28  ;;  %337 = sbr.rel (%p1482_p11) target bundleno = 65 (0x41), region = 40 }
  0x17   : > { %p50_p10 = scmp.eq.s32.totalorder %s49_s30, 0 }
  0x19   : > { %s2135_s12 = scalar_select %p50_p10, %s1984_s17, %s52_s11  }
  0x1b   : > { %340 = sbr.rel (!%p61_p6) target bundleno = 65 (0x41), region = 44  ;;  %s341_s13 = sand.u32 (%p61_p6), 1, %s1984_s17  }
  0x1c   : > { %s1485_s14 = sshll.u32 (%p61_p6), %s2877_s26, 4  ;;  %s1483_s15 = sshll.u32 (%p61_p6), %s341_s13, 8 }
  0x1d   : > { %s351_s24 = ssub.s32 (%p61_p6), 38, %s1485_s14  ;;  %s2143_s28 = scalar_lea.sflag (%p61_p6), [#allocation4], %s341_s13 }
  0x1e   : > { %p352_p12 = scmp.lt.s32.totalorder (%p61_p6), %s351_s24, 16  ;;  %s345_s30 = scalar_lea.vmem (%p61_p6), [#allocation3], %s1483_s15 }
  0x20   : > { %s2881_s24 = smov (!%p352_p12, %s351_s24), 16 }
  0x21   : > { %s2140_s25 = sshll.u32 %s2881_s24, 8 }
  0x22   : > { %s357_s27 = ssub.s32 4096, %s2140_s25 }
  0x23   : > { %358 = vsyncadd %s2143_s28, %s357_s27  ;;  %p1488_p13 = scmp.ne.s32.totalorder %s2140_s25, 0  ;;  %s1553_s11 = sshll.u32 %s2877_s26, 12 }
  0x24   : > { %s2861_s0 = sld [smem:[#allocation9_spill]]  ;;  %s364_s24 = sshll.u32 %s345_s30, 4  ;;  %s2153_s24 = int_to_ptr.vmem [resolvable:$true] %s364_s24 }
  0x2a   : > { %s2151_s14 = scalar_lea.hbm %s2861_s0, %s1553_s11  ;;  %s1916_s21 = scalar_lea.hbm %s2861_s0, 9728 }
  0x2b   : > { %s1912_s13 = scalar_lea.hbm %s2151_s14, %s2140_s25 }
  0x2c   : > { %p1913_p0 = scmp.ne.s32.totalorder %s2151_s14, %s1912_s13  ;;  %p1918_p3 = scmp.lt.s32.totalorder %s1916_s21, %s1912_s13 }
  0x2e   : > { %p1914_p1 = pnand %p1913_p0, %p1488_p13 }
  0x30   : > { %p1915_p2 = pneg %p1914_p1 }
  0x32   : > { %p1920_p4 = pnand %p1918_p3, %p1915_p2 }
  0x34   : > { %1923 = shalt.err (!%p1920_p4)
}
  0x35   : > { %s1924_s6 = scalar_lea.vmem %s2153_s24, %s2140_s25  ;;  %s2006_s23 = smov [#allocation3]  }
  0x36   : > { %p1925_p5 = scmp.ne.s32.totalorder %s2153_s24, %s1924_s6  ;;  %s1928_s26 = sshll.u32 %s2006_s23, 4  ;;  %s1929_s26 = int_to_ptr.vmem [resolvable:$false] %s1928_s26 }
  0x37   : > { %s1930_s30 = scalar_lea.vmem %s1929_s26, 8192  ;;  %p1931_p8 = scmp.lt.s32.totalorder %s2153_s24, %s1929_s26 }
  0x38   : > { %p1926_p6 = pnand %p1925_p5, %p1488_p13  ;;  %p1932_p10 = scmp.lt.s32.totalorder %s1930_s30, %s1924_s6 }
  0x3a   : > { %p1927_p7 = pneg %p1926_p6  ;;  %p1933_p11 = por %p1932_p10, %p1931_p8 }
  0x3c   : > { %p1934_p12 = pnand %p1933_p11, %p1927_p7 }
  0x3e   : > { %1937 = shalt.err (!%p1934_p12)
}
  0x3f   : > { %s2007_s21 = smov 256   ;;  %s2008_s11 = smov 16  }
  0x40   : > { %370 = dma.hbm_to_vmem [thread:$0]  (%p1488_p13), %s2151_s14, %s2140_s25, %s2153_s24, %s2143_s28, %s2007_s21, %s2007_s21, %s2008_s11  }
  0x41 PF: > { %p1493_p0 = scmp.ge.s32.totalorder %s2004_s22, 1  ;;  %p372_p1 = scmp.lt.s32.totalorder %s2004_s22, 5 }
  0x43   : > { %p373_p2 = pnand %p1493_p0, %p372_p1 }
  0x44   : > { %s378_s13 = sand.u32 (!%p373_p2), 1, %s1980_s16  }
  0x45   : > { %376 = sbr.rel (%p373_p2) target bundleno = 1360 (0x550), region = 48  ;;  %s1494_s15 = sshll.u32 (!%p373_p2), %s378_s13, 8 }
  0x46   : > { %s379_s27 = scalar_lea.sflag (!%p373_p2), [#allocation4], %s378_s13  ;;  %s2178_s6 = scalar_lea.vmem (!%p373_p2), [#allocation3], %s1494_s15 }
  0x4a   : > { %1971 = dma.done.wait (%p2128_p9), %s379_s27, 4096  }
  0x4b   : > { %1973 = vsyncadd (%p2128_p9), %s379_s27, 4294963200  ;;  %s1495_s25 = sshll.u32 %s1992_s19, 1  ;;  %p445_p13 = scmp.lt.s32.totalorder %s1992_s19, 1 }
  0x4c   : > { %s2187_s28 = sadd.s32 %s1988_s18, %s1495_s25  ;;  %p1497_p9 = scmp.ne.s32.totalorder %s1988_s18, 0 }
  0x4d   : > { %p440_p3 = scmp.lt.s32.totalorder %s2187_s28, 3  ;;  %s2883_s19 = smov (!%p445_p13, %s1992_s19), 1 }
  0x4e   : > { %s2197_s29 = scalar_lea.vmem %s2850_s8, %s2883_s19  ;;  %s2202_s21 = scalar_lea.vmem %s2851_s9, %s2883_s19 }
  0x4f   : > { %s2192_s14 = scalar_select %p440_p3, %s2187_s28, 3 }
  0x50   : > { %s2211_s0 = scalar_lea.vmem %s2852_s10, %s2883_s19  ;;  %459 = sbr.rel (%p1497_p9) target bundleno = 88 (0x58), region = 56 }
  0x51   : > { %s442_s15 = scalar_lea.vmem %s2849_s7, %s2192_s14 }
  0x55   : > { %vm460_vm0 = vcmask 0   ;;  %v2009_v0 = vmov -1e+30   ;;  %v2010_v1 = vmov 0.0  }
  0x56   : > { %461 = vst.msk [vmem:[%s2197_s29] sm:$0x1] %vm460_vm0, %v2009_v0  ;;  %462 = vst.msk [vmem:[%s2202_s21] sm:$0x1] %vm460_vm0, %v2010_v1 }
  0x57   : > { %463 = vst [vmem:[%s2211_s0] sm:$0x1] %v2010_v1 }
  0x58 PF: > { %p1498_p4 = scmp.ge.s32.totalorder %s2187_s28, 3 }
  0x59   : > { %s1500_s13 = sshll.u32 (!%p1498_p4), %s2187_s28, 7  ;;  %s1133_s19 = sld [smem:[#allocation2]] (!%p1498_p4) }
  0x5a   : > { %467 = sbr.rel (%p1498_p4) target bundleno = 1360 (0x550), region = 60 }
  0x5f   : > { %v531_v2 = vld [vmem:[%s2843_s1 + $0xf8] sm:$0xff]  ;;  %v530_v4 = vld [vmem:[%s2843_s1 + $0xf0] sm:$0xff]  ;;  %v529_v6 = vld [vmem:[%s2843_s1 + $0xe8] sm:$0xff] }
  0x60   : > { %v515_v3 = vld [vmem:[%s2843_s1 + $0x78] sm:$0xff]  ;;  %1554 = vmatprep.subr.mxu0 %v531_v2  ;;  %v514_v5 = vld [vmem:[%s2843_s1 + $0x70] sm:$0xff]  ;;  %v513_v7 = vld [vmem:[%s2843_s1 + $0x68] sm:$0xff] }
  0x61   : > { %1555 = vmatpush3.msra.mxu0 %v515_v3  ;;  %v528_v8 = vld [vmem:[%s2843_s1 + $0xe0] sm:$0xff]  ;;  %v527_v10 = vld [vmem:[%s2843_s1 + $0xd8] sm:$0xff]  ;;  %v526_v12 = vld [vmem:[%s2843_s1 + $0xd0] sm:$0xff] }
  0x62   : > { %1556 = vmatprep.subr.mxu0 %v530_v4  ;;  %v512_v9 = vld [vmem:[%s2843_s1 + $0x60] sm:$0xff]  ;;  %v511_v11 = vld [vmem:[%s2843_s1 + $0x58] sm:$0xff]  ;;  %v510_v13 = vld [vmem:[%s2843_s1 + $0x50] sm:$0xff] }
  0x63   : > { %1557 = vmatpush3.msra.mxu0 %v514_v5  ;;  %v525_v14 = vld [vmem:[%s2843_s1 + $0xc8] sm:$0xff]  ;;  %v524_v17 = vld [vmem:[%s2843_s1 + $0xc0] sm:$0xff]  ;;  %v523_v19 = vld [vmem:[%s2843_s1 + $0xb8] sm:$0xff] }
  0x64   : > { %1558 = vmatprep.subr.mxu0 %v529_v6  ;;  %v469_v15 = vld [vmem:[%s2178_s6 + $0x8] sm:$0xff]  ;;  %v508_v18 = vld [vmem:[%s2843_s1 + $0x40] sm:$0xff]  ;;  %v507_v20 = vld [vmem:[%s2843_s1 + $0x38] sm:$0xff] }
  0x65   : > { %1559 = vmatpush3.msra.mxu0 %v513_v7  ;;  %v509_v16 = vld [vmem:[%s2843_s1 + $0x48] sm:$0xff]  ;;  %603 = vmatprep.mubr.f32.mxu0 %v469_v15  ;;  %v522_v21 = vld [vmem:[%s2843_s1 + $0xb0] sm:$0xff]  ;;  %v520_v25 = vld [vmem:[%s2843_s1 + $0xa0] sm:$0xff] }
  0x66   : > { %1560 = vmatprep.subr.mxu0 %v528_v8  ;;  %v506_v22 = vld [vmem:[%s2843_s1 + $0x30] sm:$0xff]  ;;  %v521_v23 = vld [vmem:[%s2843_s1 + $0xa8] sm:$0xff]  ;;  %v504_v26 = vld [vmem:[%s2843_s1 + $0x20] sm:$0xff] }
  0x67   : > { %1561 = vmatpush3.msra.mxu0 %v512_v9  ;;  %v505_v24 = vld [vmem:[%s2843_s1 + $0x28] sm:$0xff]  ;;  %v830_v27 = vld [vmem:[%s2845_s3 + $0xf8] sm:$0xff]  ;;  %v829_v28 = vld [vmem:[%s2845_s3 + $0xf0] sm:$0xff] }
  0x68   : > { %1562 = vmatprep.subr.mxu0 %v527_v10  ;;  %v519_v29 = vld [vmem:[%s2843_s1 + $0x98] sm:$0xff]  ;;  %843 = vmatprep.subr.mxu1 %v830_v27  ;;  %v828_v30 = vld [vmem:[%s2845_s3 + $0xe8] sm:$0xff]  ;;  %v827_v31 = vld [vmem:[%s2845_s3 + $0xe0] sm:$0xff] }
  0x69   : > { %1563 = vmatpush3.msra.mxu0 %v511_v11  ;;  %v503_v32 = vld [vmem:[%s2843_s1 + $0x18] sm:$0xff]  ;;  %844 = vmatpush1.msra.mxu1 %v829_v28  ;;  %v518_v34 = vld [vmem:[%s2843_s1 + $0x90] sm:$0xff]  ;;  %v824_v37 = vld [vmem:[%s2845_s3 + $0xc8] sm:$0xff] }
  0x6a   : > { %1564 = vmatprep.subr.mxu0 %v526_v12  ;;  %v826_v33 = vld [vmem:[%s2845_s3 + $0xd8] sm:$0xff]  ;;  %845 = vmatprep.subr.mxu1 %v828_v30  ;;  %v825_v35 = vld [vmem:[%s2845_s3 + $0xd0] sm:$0xff]  ;;  %v517_v38 = vld [vmem:[%s2843_s1 + $0x88] sm:$0xff] }
  0x6b   : > { %1565 = vmatpush3.msra.mxu0 %v510_v13  ;;  %v502_v36 = vld [vmem:[%s2843_s1 + $0x10] sm:$0xff]  ;;  %846 = vmatpush1.msra.mxu1 %v827_v31  ;;  %v823_v39 = vld [vmem:[%s2845_s3 + $0xc0] sm:$0xff]  ;;  %v501_v40 = vld [vmem:[%s2843_s1 + $0x8] sm:$0xff] }
  0x6c   : > { %1566 = vmatprep.subr.mxu0 %v525_v14  ;;  %847 = vmatprep.subr.mxu1 %v826_v33  ;;  %v822_v41 = vld [vmem:[%s2845_s3 + $0xb8] sm:$0xff]  ;;  %v516_v42 = vld [vmem:[%s2843_s1 + $0x80] sm:$0xff]  ;;  %v821_v43 = vld [vmem:[%s2845_s3 + $0xb0] sm:$0xff] }
  0x6d   : > { %1567 = vmatpush3.msra.mxu0 %v509_v16  ;;  %848 = vmatpush1.msra.mxu1 %v825_v35  ;;  %v500_v44 = vld [vmem:[%s2843_s1] sm:$0xff]  ;;  %v820_v45 = vld [vmem:[%s2845_s3 + $0xa8] sm:$0xff]  ;;  %v471_v48 = vld [vmem:[%s2178_s6 + $0x18] sm:$0xff]  ;;  %v701_v35 = vlaneseq }
  0x6e   : > { %1568 = vmatprep.subr.mxu0 %v524_v17  ;;  %849 = vmatprep.subr.mxu1 %v824_v37  ;;  %v468_v46 = vld [vmem:[%s2178_s6] sm:$0xff]  ;;  %v818_v49 = vld [vmem:[%s2845_s3 + $0x98] sm:$0xff]  ;;  %v817_v50 = vld [vmem:[%s2845_s3 + $0x90] sm:$0xff]  ;;  %v2449_v37 = vstv %s1500_s13 }
  0x6f   : > { %1569 = vmatpush3.msra.mxu0 %v508_v18  ;;  %850 = vmatpush1.msra.mxu1 %v823_v39  ;;  %v819_v47 = vld [vmem:[%s2845_s3 + $0xa0] sm:$0xff]  ;;  %v816_v51 = vld [vmem:[%s2845_s3 + $0x88] sm:$0xff]  ;;  %v470_v52 = vld [vmem:[%s2178_s6 + $0x10] sm:$0xff] }
  0x70   : > { %1570 = vmatprep.subr.mxu0 %v523_v19  ;;  %851 = vmatprep.subr.mxu1 %v822_v41  ;;  %v815_v53 = vld [vmem:[%s2845_s3 + $0x80] sm:$0xff]  ;;  %v473_v54 = vld [vmem:[%s2178_s6 + $0x28] sm:$0xff]  ;;  %v814_v55 = vld [vmem:[%s2845_s3 + $0x78] sm:$0xff] }
  0x71   : > { %1571 = vmatpush3.msra.mxu0 %v507_v20  ;;  %852 = vmatpush1.msra.mxu1 %v821_v43  ;;  %v813_v56 = vld [vmem:[%s2845_s3 + $0x70] sm:$0xff]  ;;  %v812_v57 = vld [vmem:[%s2845_s3 + $0x68] sm:$0xff]  ;;  %v472_v58 = vld [vmem:[%s2178_s6 + $0x20] sm:$0xff] }
  0x72   : > { %1572 = vmatprep.subr.mxu0 %v522_v21  ;;  %853 = vmatprep.subr.mxu1 %v820_v45  ;;  %v811_v59 = vld [vmem:[%s2845_s3 + $0x60] sm:$0xff]  ;;  %v475_v60 = vld [vmem:[%s2178_s6 + $0x38] sm:$0xff]  ;;  %v809_v62 = vld [vmem:[%s2845_s3 + $0x50] sm:$0xff] }
  0x73   : > { %1573 = vmatpush3.msra.mxu0 %v506_v22  ;;  %854 = vmatpush1.msra.mxu1 %v819_v47  ;;  %v810_v61 = vld [vmem:[%s2845_s3 + $0x58] sm:$0xff]  ;;  %v808_v63 = vld [vmem:[%s2845_s3 + $0x48] sm:$0xff]  ;;  %v474_v0 = vld [vmem:[%s2178_s6 + $0x30] sm:$0xff] }
  0x74   : > { %1574 = vmatprep.subr.mxu0 %v521_v23  ;;  %855 = vmatprep.subr.mxu1 %v818_v49  ;;  %v477_v1 = vld [vmem:[%s2178_s6 + $0x48] sm:$0xff]  ;;  %v476_v2 = vld [vmem:[%s2178_s6 + $0x40] sm:$0xff]  ;;  %v479_v3 = vld [vmem:[%s2178_s6 + $0x58] sm:$0xff] }
  0x75   : > { %1575 = vmatpush3.msra.mxu0 %v505_v24  ;;  %856 = vmatpush1.msra.mxu1 %v817_v50  ;;  %v478_v4 = vld [vmem:[%s2178_s6 + $0x50] sm:$0xff]  ;;  %v481_v5 = vld [vmem:[%s2178_s6 + $0x68] sm:$0xff]  ;;  %v480_v6 = vld [vmem:[%s2178_s6 + $0x60] sm:$0xff] }
  0x76   : > { %1576 = vmatprep.subr.mxu0 %v520_v25  ;;  %857 = vmatprep.subr.mxu1 %v816_v51  ;;  %v483_v7 = vld [vmem:[%s2178_s6 + $0x78] sm:$0xff]  ;;  %v482_v8 = vld [vmem:[%s2178_s6 + $0x70] sm:$0xff]  ;;  %v485_v9 = vld [vmem:[%s2178_s6 + $0x88] sm:$0xff] }
  0x77   : > { %1577 = vmatpush3.msra.mxu0 %v504_v26  ;;  %858 = vmatpush1.msra.mxu1 %v815_v53  ;;  %v484_v10 = vld [vmem:[%s2178_s6 + $0x80] sm:$0xff]  ;;  %v487_v11 = vld [vmem:[%s2178_s6 + $0x98] sm:$0xff]  ;;  %v486_v12 = vld [vmem:[%s2178_s6 + $0x90] sm:$0xff] }
  0x78   : > { %1578 = vmatprep.subr.mxu0 %v519_v29  ;;  %859 = vmatprep.subr.mxu1 %v814_v55  ;;  %v489_v13 = vld [vmem:[%s2178_s6 + $0xa8] sm:$0xff]  ;;  %v488_v14 = vld [vmem:[%s2178_s6 + $0xa0] sm:$0xff]  ;;  %v491_v15 = vld [vmem:[%s2178_s6 + $0xb8] sm:$0xff] }
  0x79   : > { %1579 = vmatpush3.msra.mxu0 %v503_v32  ;;  %860 = vmatpush1.msra.mxu1 %v813_v56  ;;  %v490_v16 = vld [vmem:[%s2178_s6 + $0xb0] sm:$0xff]  ;;  %v493_v17 = vld [vmem:[%s2178_s6 + $0xc8] sm:$0xff]  ;;  %v492_v18 = vld [vmem:[%s2178_s6 + $0xc0] sm:$0xff] }
  0x7a   : > { %1580 = vmatprep.subr.mxu0 %v518_v34  ;;  %861 = vmatprep.subr.mxu1 %v812_v57  ;;  %v495_v19 = vld [vmem:[%s2178_s6 + $0xd8] sm:$0xff]  ;;  %v494_v20 = vld [vmem:[%s2178_s6 + $0xd0] sm:$0xff]  ;;  %v497_v21 = vld [vmem:[%s2178_s6 + $0xe8] sm:$0xff]  ;;  %v2011_v34 = vmov 0.0  }
  0x7b   : > { %1581 = vmatpush3.msra.mxu0 %v502_v36  ;;  %862 = vmatpush1.msra.mxu1 %v811_v59  ;;  %v496_v22 = vld [vmem:[%s2178_s6 + $0xe0] sm:$0xff]  ;;  %v499_v23 = vld [vmem:[%s2178_s6 + $0xf8] sm:$0xff]  ;;  %v498_v24 = vld [vmem:[%s2178_s6 + $0xf0] sm:$0xff]  ;;  %v2447_v36 = vshrl.u32 %v701_v35, 7 }
  0x7c   : > { %1582 = vmatprep.subr.mxu0 %v517_v38  ;;  %863 = vmatprep.subr.mxu1 %v810_v61  ;;  %v807_v25 = vld [vmem:[%s2845_s3 + $0x40] sm:$0xff]  ;;  %v806_v26 = vld [vmem:[%s2845_s3 + $0x38] sm:$0xff]  ;;  %v805_v27 = vld [vmem:[%s2845_s3 + $0x30] sm:$0xff] }
  0x7d   : > { %1583 = vmatpush3.msra.mxu0 %v501_v40  ;;  %864 = vmatpush1.msra.mxu1 %v809_v62  ;;  %v804_v28 = vld [vmem:[%s2845_s3 + $0x28] sm:$0xff]  ;;  %v803_v29 = vld [vmem:[%s2845_s3 + $0x20] sm:$0xff]  ;;  %v802_v30 = vld [vmem:[%s2845_s3 + $0x18] sm:$0xff]  ;;  %v2458_v41 = vadd.s32 %v2449_v37, %v2447_v36  ;;  %v705_v55 = vadd.s32 24, %v2447_v36  ;;  %v706_v62 = vadd.s32 32, %v2447_v36 }
  0x7e   : > { %1584 = vmatprep.subr.mxu0 %v516_v42  ;;  %865 = vmatprep.subr.mxu1 %v808_v63  ;;  %v801_v31 = vld [vmem:[%s2845_s3 + $0x10] sm:$0xff]  ;;  %v800_v32 = vld [vmem:[%s2845_s3 + $0x8] sm:$0xff]  ;;  %v799_v33 = vld [vmem:[%s2845_s3] sm:$0xff]  ;;  %v703_v42 = vadd.s32 8, %v2447_v36 }
  0x7f   : > { %1585 = vmatpush3.msra.mxu0 %v500_v44  ;;  %866 = vmatpush1.msra.mxu1 %v807_v25  ;;  %v2454_v39 = vld [vmem:[%s2844_s2] ss:$0 sm:$0xff]  ;;  %vm735_vm1 = vcmp.lt.s32.totalorder %v2458_v41, 300  ;;  %v2494_v61 = vadd.s32 %v2449_v37, %v705_v55 }
  0x80   : > { %604 = vmatmul.mubr.f32.vlgmr.msra.gmra.mxu0 %v468_v46  ;;  %867 = vmatprep.subr.mxu1 %v806_v26  ;;  %v2466_v47 = vadd.s32 %v2449_v37, %v703_v42  ;;  %v710_v26 = vadd.s32 64, %v2447_v36 }
  0x81   : > { %608 = vmatprep.mubr.f32.mxu0 %v471_v48  ;;  %868 = vmatpush1.msra.mxu1 %v805_v27  ;;  %v704_v48 = vadd.s32 16, %v2447_v36  ;;  %vm738_vm4 = vcmp.lt.s32.totalorder %v2494_v61, 300 }
  0x82   : > { %869 = vmatprep.subr.mxu1 %v804_v28  ;;  %907 = vmatprep.mubr.f32.mxu1 %v2011_v34  ;;  %vm736_vm2 = vcmp.lt.s32.totalorder %v2466_v47, 300 }
  0x83   : > { %870 = vmatpush1.msra.mxu1 %v803_v29  ;;  %1668 = vmatprep.subr.mxu0 %v2011_v34 }
  0x84   : > { %609 = vmatmul.mubr.f32.gmra.mxu0 %v470_v52  ;;  %871 = vmatprep.subr.mxu1 %v802_v30 }
  0x85   : > { %613 = vmatprep.mubr.f32.mxu0 %v473_v54  ;;  %872 = vmatpush1.msra.mxu1 %v801_v31  ;;  %v2480_v54 = vadd.s32 %v2449_v37, %v704_v48  ;;  %v712_v48 = vadd.s32 80, %v2447_v36 }
  0x86   : > { %873 = vmatprep.subr.mxu1 %v800_v32  ;;  %v2564_v32 = vadd.s32 %v2449_v37, %v710_v26 }
  0x87   : > { %874 = vmatpush1.msra.mxu1 %v799_v33  ;;  %vm737_vm3 = vcmp.lt.s32.totalorder %v2480_v54, 300  ;;  %v711_v33 = vadd.s32 72, %v2447_v36  ;;  %v831_v54 = vld [vmem:[%s2846_s4] sm:$0x3] }
  0x88   : > { %614 = vmatmul.mubr.f32.gmra.mxu0 %v472_v58  ;;  %1703 = vmatprep.subr.mxu1 %v2011_v34  ;;  %vm743_vm9 = vcmp.lt.s32.totalorder %v2564_v32, 300 }
  0x89   : > { %618 = vmatprep.mubr.f32.mxu0 %v475_v60 }
  0x8c   : > { %619 = vmatmul.mubr.f32.gmra.mxu0 %v474_v0 }
  0x8d   : > { %623 = vmatprep.mubr.f32.mxu0 %v477_v1 }
  0x90   : > { %624 = vmatmul.mubr.f32.gmra.mxu0 %v476_v2 }
  0x91   : > { %628 = vmatprep.mubr.f32.mxu0 %v479_v3 }
  0x94   : > { %629 = vmatmul.mubr.f32.gmra.mxu0 %v478_v4  ;;  %v2508_v4 = vadd.s32 %v2449_v37, %v706_v62 }
  0x95   : > { %633 = vmatprep.mubr.f32.mxu0 %v481_v5  ;;  %v707_v5 = vadd.s32 40, %v2447_v36 }
  0x96   : > { %vm739_vm5 = vcmp.lt.s32.totalorder %v2508_v4, 300  ;;  %v2699_v4 = vsub.s32 0, %v2447_v36 }
  0x98   : > { %634 = vmatmul.mubr.f32.gmra.mxu0 %v480_v6 }
  0x99   : > { %638 = vmatprep.mubr.f32.mxu0 %v483_v7 }
  0x9c   : > { %639 = vmatmul.mubr.f32.gmra.mxu0 %v482_v8 }
  0x9d   : > { %643 = vmatprep.mubr.f32.mxu0 %v485_v9 }
  0xa0   : > { %644 = vmatmul.mubr.f32.gmra.mxu0 %v484_v10 }
  0xa1   : > { %648 = vmatprep.mubr.f32.mxu0 %v487_v11  ;;  %v2522_v11 = vadd.s32 %v2449_v37, %v707_v5 }
  0xa3   : > { %vm740_vm6 = vcmp.lt.s32.totalorder %v2522_v11, 300 }
  0xa4   : > { %649 = vmatmul.mubr.f32.gmra.mxu0 %v486_v12  ;;  %v708_v12 = vadd.s32 48, %v2447_v36 }
  0xa5   : > { %653 = vmatprep.mubr.f32.mxu0 %v489_v13 }
  0xa8   : > { %654 = vmatmul.mubr.f32.gmra.mxu0 %v488_v14 }
  0xa9   : > { %658 = vmatprep.mubr.f32.mxu0 %v491_v15 }
  0xac   : > { %659 = vmatmul.mubr.f32.gmra.mxu0 %v490_v16 }
  0xad   : > { %663 = vmatprep.mubr.f32.mxu0 %v493_v17 }
  0xb0   : > { %664 = vmatmul.mubr.f32.gmra.mxu0 %v492_v18  ;;  %v2536_v18 = vadd.s32 %v2449_v37, %v708_v12 }
  0xb1   : > { %668 = vmatprep.mubr.f32.mxu0 %v495_v19  ;;  %v709_v19 = vadd.s32 56, %v2447_v36 }
  0xb2   : > { %vm741_vm7 = vcmp.lt.s32.totalorder %v2536_v18, 300 }
  0xb3   : > { %v2550_v25 = vadd.s32 %v2449_v37, %v709_v19 }
  0xb4   : > { %669 = vmatmul.mubr.f32.gmra.mxu0 %v494_v20 }
  0xb5   : > { %673 = vmatprep.mubr.f32.mxu0 %v497_v21  ;;  %vm742_vm8 = vcmp.lt.s32.totalorder %v2550_v25, 300 }
  0xb8   : > { %674 = vmatmul.mubr.f32.gmra.mxu0 %v496_v22 }
  0xb9   : > { %678 = vmatprep.mubr.f32.mxu0 %v499_v23 }
  0xbc   : > { %679 = vmatmul.mubr.f32.gmra.mxu0 %v498_v24 }
 0x140   : > { %v1586_v38 = vpop.f32.mrf.mxu0 }
 0x142   : > { %v1587_v40 = vpop.f32.mrf.mxu0 }
 0x143   : > { %v1588_v43 = vadd.f32 %v1587_v40, %v1586_v38 }
 0x144   : > { %v1589_v44 = vpop.f32.mrf.mxu0 }
 0x145   : > { %v2462_v45 = vadd.f32 %v1588_v43, %v2454_v39 }
 0x146   : > { %v1590_v46 = vpop.f32.mrf.mxu0 }
 0x147   : > { %v684_v49 = vmax.f32 %v2462_v45, 0.0  ;;  %v1591_v50 = vadd.f32 %v1590_v46, %v1589_v44  ;;  %v2578_v46 = vadd.s32 %v2449_v37, %v711_v33  ;;  %v716_v33 = vadd.s32 112, %v2447_v36 }
 0x148   : > { %v1592_v51 = vpop.f32.mrf.mxu0 }
 0x149   : > { %v2471_v52 = vadd.f32 %v1591_v50, %v2454_v39  ;;  %1501 = vmatmul.mubr.msk.f32.vlgmr.msra.gmra.mxu1 %vm735_vm1, %v684_v49  ;;  %vm744_vm10 = vcmp.lt.s32.totalorder %v2578_v46, 300 }
 0x14a   : > { %v1593_v53 = vpop.f32.mrf.mxu0  ;;  %913 = vmatprep.mubr.f32.mxu1 %v2011_v34 }
 0x14b   : > { %v685_v56 = vmax.f32 %v2471_v52, 0.0  ;;  %v1594_v57 = vadd.f32 %v1593_v53, %v1592_v51 }
 0x14c   : > { %v1595_v58 = vpop.f32.mrf.mxu0 }
 0x14d   : > { %v2485_v59 = vadd.f32 %v1594_v57, %v2454_v39  ;;  %1502 = vmatmul.mubr.msk.f32.gmra.mxu1 %vm736_vm2, %v685_v56 }
 0x14e   : > { %v1596_v60 = vpop.f32.mrf.mxu0  ;;  %919 = vmatprep.mubr.f32.mxu1 %v2011_v34 }
 0x14f   : > { %v686_v63 = vmax.f32 %v2485_v59, 0.0  ;;  %v1597_v0 = vadd.f32 %v1596_v60, %v1595_v58  ;;  %v2592_v58 = vadd.s32 %v2449_v37, %v712_v48  ;;  %v713_v60 = vadd.s32 88, %v2447_v36 }
 0x150   : > { %v1598_v1 = vpop.f32.mrf.mxu0 }
 0x151   : > { %v2499_v2 = vadd.f32 %v1597_v0, %v2454_v39  ;;  %1503 = vmatmul.mubr.msk.f32.gmra.mxu1 %vm737_vm3, %v686_v63  ;;  %vm745_vm11 = vcmp.lt.s32.totalorder %v2592_v58, 300 }
 0x152   : > { %v1599_v3 = vpop.f32.mrf.mxu0  ;;  %925 = vmatprep.mubr.f32.mxu1 %v2011_v34 }
 0x153   : > { %v687_v6 = vmax.f32 %v2499_v2, 0.0  ;;  %v1600_v7 = vadd.f32 %v1599_v3, %v1598_v1 }
 0x154   : > { %v1601_v8 = vpop.f32.mrf.mxu0 }
 0x155   : > { %v2513_v9 = vadd.f32 %v1600_v7, %v2454_v39  ;;  %1504 = vmatmul.mubr.msk.f32.gmra.mxu1 %vm738_vm4, %v687_v6  ;;  %v730_v7 = vadd.s32 %v2449_v37, %v713_v60 }
 0x156   : > { %v1602_v10 = vpop.f32.mrf.mxu0  ;;  %931 = vmatprep.mubr.f32.mxu1 %v2011_v34 }
 0x157   : > { %v688_v13 = vmax.f32 %v2513_v9, 0.0  ;;  %v1603_v14 = vadd.f32 %v1602_v10, %v1601_v8  ;;  %v714_v8 = vadd.s32 96, %v2447_v36  ;;  %vm746_vm12 = vcmp.lt.s32.totalorder %v730_v7, 300 }
 0x158   : > { %v1604_v15 = vpop.f32.mrf.mxu0 }
 0x159   : > { %v2527_v16 = vadd.f32 %v1603_v14, %v2454_v39  ;;  %1505 = vmatmul.mubr.msk.f32.gmra.mxu1 %vm739_vm5, %v688_v13  ;;  %v731_v19 = vadd.s32 %v2449_v37, %v714_v8 }
 0x15a   : > { %v1605_v17 = vpop.f32.mrf.mxu0  ;;  %937 = vmatprep.mubr.f32.mxu1 %v2011_v34 }
 0x15b   : > { %v689_v20 = vmax.f32 %v2527_v16, 0.0  ;;  %v1606_v21 = vadd.f32 %v1605_v17, %v1604_v15  ;;  %vm747_vm13 = vcmp.lt.s32.totalorder %v731_v19, 300  ;;  %v2703_v16 = vrot.slane %v831_v54, %v2699_v4 }
 0x15c   : > { %v1607_v22 = vpop.f32.mrf.mxu0 }
 0x15d   : > { %v2541_v23 = vadd.f32 %v1606_v21, %v2454_v39  ;;  %1506 = vmatmul.mubr.msk.f32.gmra.mxu1 %vm740_vm6, %v689_v20  ;;  %v715_v21 = vadd.s32 104, %v2447_v36 }
 0x15e   : > { %v1608_v24 = vpop.f32.mrf.mxu0  ;;  %943 = vmatprep.mubr.f32.mxu1 %v2011_v34 }
 0x15f   : > { %v690_v27 = vmax.f32 %v2541_v23, 0.0  ;;  %v1609_v28 = vadd.f32 %v1608_v24, %v1607_v22 }
 0x160   : > { %v1610_v29 = vpop.f32.mrf.mxu0 }
 0x161   : > { %v2555_v30 = vadd.f32 %v1609_v28, %v2454_v39  ;;  %1507 = vmatmul.mubr.msk.f32.gmra.mxu1 %vm741_vm7, %v690_v27 }
 0x162   : > { %v1611_v31 = vpop.f32.mrf.mxu0  ;;  %949 = vmatprep.mubr.f32.mxu1 %v2011_v34 }
 0x163   : > { %v691_v38 = vmax.f32 %v2555_v30, 0.0  ;;  %v1612_v40 = vadd.f32 %v1611_v31, %v1610_v29  ;;  %v732_v31 = vadd.s32 %v2449_v37, %v715_v21 }
 0x164   : > { %v1613_v42 = vpop.f32.mrf.mxu0 }
 0x165   : > { %v2569_v43 = vadd.f32 %v1612_v40, %v2454_v39  ;;  %1508 = vmatmul.mubr.msk.f32.gmra.mxu1 %vm742_vm8, %v691_v38  ;;  %vm748_vm14 = vcmp.lt.s32.totalorder %v732_v31, 300 }
 0x166   : > { %v1614_v44 = vpop.f32.mrf.mxu0  ;;  %955 = vmatprep.mubr.f32.mxu1 %v2011_v34 }
 0x167   : > { %v692_v50 = vmax.f32 %v2569_v43, 0.0  ;;  %v1615_v51 = vadd.f32 %v1614_v44, %v1613_v42 }
 0x168   : > { %v1616_v53 = vpop.f32.mrf.mxu0 }
 0x169   : > { %v2583_v55 = vadd.f32 %v1615_v51, %v2454_v39  ;;  %1509 = vmatmul.mubr.msk.f32.gmra.mxu1 %vm743_vm9, %v692_v50 }
 0x16a   : > { %v1617_v57 = vpop.f32.mrf.mxu0  ;;  %961 = vmatprep.mubr.f32.mxu1 %v2011_v34 }
 0x16b   : > { %v693_v62 = vmax.f32 %v2583_v55, 0.0  ;;  %v1618_v0 = vadd.f32 %v1617_v57, %v1616_v53  ;;  %v733_v53 = vadd.s32 %v2449_v37, %v716_v33  ;;  %v717_v57 = vadd.s32 120, %v2447_v36 }
 0x16c   : > { %v1619_v1 = vpop.f32.mrf.mxu0 }
 0x16d   : > { %v2597_v3 = vadd.f32 %v1618_v0, %v2454_v39  ;;  %1510 = vmatmul.mubr.msk.f32.gmra.mxu1 %vm744_vm10, %v693_v62  ;;  %vm749_vm15 = vcmp.lt.s32.totalorder %v733_v53, 300  ;;  %v734_v8 = vadd.s32 %v2449_v37, %v717_v57 }
 0x16e   : > { %v1620_v5 = vpop.f32.mrf.mxu0  ;;  %967 = vmatprep.mubr.f32.mxu1 %v2011_v34 }
 0x16f   : > { %v694_v10 = vmax.f32 %v2597_v3, 0.0  ;;  %v1621_v12 = vadd.f32 %v1620_v5, %v1619_v1  ;;  %vm750_vm0 = vcmp.lt.s32.totalorder %v734_v8, 300 }
 0x170   : > { %v1622_v14 = vpop.f32.mrf.mxu0 }
 0x171   : > { %v661_v15 = vadd.f32 %v1621_v12, %v2454_v39  ;;  %1511 = vmatmul.mubr.msk.f32.gmra.mxu1 %vm745_vm11, %v694_v10 }
 0x172   : > { %v1623_v17 = vpop.f32.mrf.mxu0  ;;  %973 = vmatprep.mubr.f32.mxu1 %v2011_v34 }
 0x173   : > { %v695_v22 = vmax.f32 %v661_v15, 0.0  ;;  %v1624_v24 = vadd.f32 %v1623_v17, %v1622_v14 }
 0x174   : > { %v1625_v26 = vpop.f32.mrf.mxu0 }
 0x175   : > { %v666_v28 = vadd.f32 %v1624_v24, %v2454_v39  ;;  %1512 = vmatmul.mubr.msk.f32.gmra.mxu1 %vm746_vm12, %v695_v22 }
 0x176   : > { %v1626_v29 = vpop.f32.mrf.mxu0  ;;  %979 = vmatprep.mubr.f32.mxu1 %v2011_v34 }
 0x177   : > { %v696_v40 = vmax.f32 %v666_v28, 0.0  ;;  %v1627_v42 = vadd.f32 %v1626_v29, %v1625_v26 }
 0x178   : > { %v1628_v44 = vpop.f32.mrf.mxu0 }
 0x179   : > { %v671_v48 = vadd.f32 %v1627_v42, %v2454_v39  ;;  %1513 = vmatmul.mubr.msk.f32.gmra.mxu1 %vm747_vm13, %v696_v40 }
 0x17a   : > { %v1629_v51 = vpop.f32.mrf.mxu0  ;;  %985 = vmatprep.mubr.f32.mxu1 %v2011_v34 }
 0x17b   : > { %v697_v60 = vmax.f32 %v671_v48, 0.0  ;;  %v1630_v0 = vadd.f32 %v1629_v51, %v1628_v44 }
 0x17c   : > { %v1631_v1 = vpop.f32.mrf.mxu0 }
 0x17d   : > { %v676_v3 = vadd.f32 %v1630_v0, %v2454_v39  ;;  %1514 = vmatmul.mubr.msk.f32.gmra.mxu1 %vm748_vm14, %v697_v60 }
 0x17e   : > { %v1632_v5 = vpop.f32.mrf.mxu0  ;;  %991 = vmatprep.mubr.f32.mxu1 %v2011_v34 }
 0x17f   : > { %v698_v12 = vmax.f32 %v676_v3, 0.0  ;;  %v1633_v14 = vadd.f32 %v1632_v5, %v1631_v1 }
 0x181   : > { %v681_v15 = vadd.f32 %v1633_v14, %v2454_v39  ;;  %1515 = vmatmul.mubr.msk.f32.gmra.mxu1 %vm749_vm15, %v698_v12  ;;  %v839_v39 = vsub.s32 1, %v2447_v36 }
 0x182   : > { %997 = vmatprep.mubr.f32.mxu1 %v2011_v34 }
 0x183   : > { %v699_v17 = vmax.f32 %v681_v15, 0.0  ;;  %v2694_v59 = vrot.slane %v831_v54, %v839_v39 }
 0x185   : > { %1516 = vmatmul.mubr.msk.f32.gmra.mxu1 %vm750_vm0, %v699_v17 }
 0x186   : > { %1704 = vmatpush3.msk.msra.mxu1 %vm750_vm0, %v699_v17 }
 0x187   : > { %1705 = vmatprep.subr.mxu1 %v2011_v34 }
 0x188   : > { %1706 = vmatpush3.msk.msra.mxu1 %vm749_vm15, %v698_v12 }
 0x189   : > { %1707 = vmatprep.subr.mxu1 %v2011_v34 }
 0x18a   : > { %1708 = vmatpush3.msk.msra.mxu1 %vm748_vm14, %v697_v60 }
 0x18b   : > { %1709 = vmatprep.subr.mxu1 %v2011_v34 }
 0x18c   : > { %1710 = vmatpush3.msk.msra.mxu1 %vm747_vm13, %v696_v40 }
 0x18d   : > { %1711 = vmatprep.subr.mxu1 %v2011_v34 }
 0x18e   : > { %1712 = vmatpush3.msk.msra.mxu1 %vm746_vm12, %v695_v22 }
 0x18f   : > { %1713 = vmatprep.subr.mxu1 %v2011_v34 }
 0x190   : > { %1714 = vmatpush3.msk.msra.mxu1 %vm745_vm11, %v694_v10 }
 0x191   : > { %1715 = vmatprep.subr.mxu1 %v2011_v34 }
 0x192   : > { %1716 = vmatpush3.msk.msra.mxu1 %vm744_vm10, %v693_v62 }
 0x193   : > { %1717 = vmatprep.subr.mxu1 %v2011_v34 }
 0x194   : > { %1718 = vmatpush3.msk.msra.mxu1 %vm743_vm9, %v692_v50 }
 0x195   : > { %1719 = vmatprep.subr.mxu1 %v2011_v34 }
 0x196   : > { %1720 = vmatpush3.msk.msra.mxu1 %vm742_vm8, %v691_v38 }
 0x197   : > { %1721 = vmatprep.subr.mxu1 %v2011_v34 }
 0x198   : > { %1722 = vmatpush3.msk.msra.mxu1 %vm741_vm7, %v690_v27 }
 0x199   : > { %1723 = vmatprep.subr.mxu1 %v2011_v34 }
 0x19a   : > { %1724 = vmatpush3.msk.msra.mxu1 %vm740_vm6, %v689_v20 }
 0x19b   : > { %1725 = vmatprep.subr.mxu1 %v2011_v34 }
 0x19c   : > { %1726 = vmatpush3.msk.msra.mxu1 %vm739_vm5, %v688_v13 }
 0x19d   : > { %1727 = vmatprep.subr.mxu1 %v2011_v34 }
 0x19e   : > { %1728 = vmatpush3.msk.msra.mxu1 %vm738_vm4, %v687_v6  ;;  %vm1238_vm4 = vcmask 0  }
 0x19f   : > { %1729 = vmatprep.subr.mxu1 %v2011_v34 }
 0x1a0   : > { %1730 = vmatpush3.msk.msra.mxu1 %vm737_vm3, %v686_v63  ;;  %vm1212_vm3 = vcmask 1040384  }
 0x1a1   : > { %1731 = vmatprep.subr.mxu1 %v2011_v34 }
 0x1a2   : > { %1732 = vmatpush3.msk.msra.mxu1 %vm736_vm2, %v685_v56 }
 0x1a3   : > { %1733 = vmatprep.subr.mxu1 %v2011_v34 }
 0x1a4   : > { %1734 = vmatpush3.msk.msra.mxu1 %vm735_vm1, %v684_v49  ;;  %vm2012_vm1 = vmmov 0  }
 0x1a5   : > { %1700 = vmatprep.mubr.msk.f32.mxu0 %vm2012_vm1, %v2011_v34  ;;  %1735 = vmatprep.mubr.msk.f32.mxu1 %vm2012_vm1, %v2011_v34 }
 0x209   : > { %v909_v61 = vpop.f32.mrf.mxu1 }
 0x20a   : > { %v910_v27 = vadd.f32 %v909_v61, %v2703_v16 }
 0x20b   : > { %v911_v52 = vpop.f32.mrf.mxu1 }
 0x20c   : > { %v912_v47 = vadd.f32 %v911_v52, %v2694_v59 }
 0x20d   : > { %v915_v56 = vpop.f32.mrf.mxu1 }
 0x20e   : > { %v1517_v63 = vmul.f32 -1.442695, %v912_v47  ;;  %v916_v50 = vadd.f32 %v915_v56, %v2703_v16 }
 0x20f   : > { %v917_v2 = vpop.f32.mrf.mxu1 }
 0x210   : > { %1812 = vpow2.f32 %v1517_v63  ;;  %v918_v45 = vadd.f32 %v917_v2, %v2694_v59 }
 0x211   : > { %v921_v41 = vpop.f32.mrf.mxu1 }
 0x212   : > { %v1518_v49 = vmul.f32 -1.442695, %v918_v45  ;;  %v922_v21 = vadd.f32 %v921_v41, %v2703_v16 }
 0x213   : > { %v923_v6 = vpop.f32.mrf.mxu1 }
 0x214   : > { %1814 = vpow2.f32 %v1518_v49  ;;  %v924_v9 = vadd.f32 %v923_v6, %v2694_v59 }
 0x215   : > { %v927_v11 = vpop.f32.mrf.mxu1 }
 0x216   : > { %v1519_v13 = vmul.f32 -1.442695, %v924_v9  ;;  %v928_v33 = vadd.f32 %v927_v11, %v2703_v16 }
 0x217   : > { %v929_v18 = vpop.f32.mrf.mxu1 }
 0x218   : > { %1816 = vpow2.f32 %v1519_v13  ;;  %v930_v20 = vadd.f32 %v929_v18, %v2694_v59 }
 0x219   : > { %v933_v23 = vpop.f32.mrf.mxu1 }
 0x21a   : > { %v1520_v25 = vmul.f32 -1.442695, %v930_v20  ;;  %v934_v0 = vadd.f32 %v933_v23, %v2703_v16 }
 0x21b   : > { %v935_v30 = vpop.f32.mrf.mxu1 }
 0x21c   : > { %1818 = vpow2.f32 %v1520_v25  ;;  %v936_v36 = vadd.f32 %v935_v30, %v2694_v59 }
 0x21d   : > { %v1813_v32 = vpop.eup %1812  ;;  %v939_v38 = vpop.f32.mrf.mxu1  ;;  %1820 = vtanh.f32 %v910_v27 }
 0x21e   : > { %v1068_v43 = vadd.f32 1.0, %v1813_v32  ;;  %v1521_v46 = vmul.f32 -1.442695, %v936_v36  ;;  %v940_v17 = vadd.f32 %v939_v38, %v2703_v16 }
 0x21f   : > { %v941_v55 = vpop.f32.mrf.mxu1 }
 0x220   : > { %1822 = vrcp.f32 %v1068_v43  ;;  %v942_v58 = vadd.f32 %v941_v55, %v2694_v59 }
 0x221   : > { %v1815_v62 = vpop.eup %1814  ;;  %1824 = vpow2.f32 %v1521_v46  ;;  %v945_v7 = vpop.f32.mrf.mxu1 }
 0x222   : > { %v1069_v10 = vadd.f32 1.0, %v1815_v62  ;;  %v1522_v19 = vmul.f32 -1.442695, %v942_v58  ;;  %1826 = vtanh.f32 %v916_v50  ;;  %v946_v2 = vadd.f32 %v945_v7, %v2703_v16 }
 0x223   : > { %v947_v22 = vpop.f32.mrf.mxu1 }
 0x224   : > { %1828 = vrcp.f32 %v1069_v10  ;;  %v948_v24 = vadd.f32 %v947_v22, %v2694_v59 }
 0x225   : > { %v1817_v26 = vpop.eup %1816  ;;  %1830 = vpow2.f32 %v1522_v19  ;;  %v951_v28 = vpop.f32.mrf.mxu1 }
 0x226   : > { %v1070_v29 = vadd.f32 1.0, %v1817_v26  ;;  %v1523_v31 = vmul.f32 -1.442695, %v948_v24  ;;  %1832 = vtanh.f32 %v922_v21  ;;  %v952_v18 = vadd.f32 %v951_v28, %v2703_v16 }
 0x227   : > { %v953_v40 = vpop.f32.mrf.mxu1 }
 0x228   : > { %1834 = vrcp.f32 %v1070_v29  ;;  %v954_v42 = vadd.f32 %v953_v40, %v2694_v59 }
 0x229   : > { %v1819_v44 = vpop.eup %1818  ;;  %1836 = vpow2.f32 %v1523_v31  ;;  %v2714_v48 = vpop.f32.mrf.mxu1 }
 0x22a   : > { %v1071_v51 = vadd.f32 1.0, %v1819_v44  ;;  %v1524_v53 = vmul.f32 -1.442695, %v954_v42  ;;  %1838 = vtanh.f32 %v928_v33  ;;  %v1821_v60 = vpop.eup %1820 }
 0x22b   : > { %v2718_v57 = vpop.f32.mrf.mxu1 }
 0x22c   : > { %1840 = vrcp.f32 %v1071_v51 }
 0x22d   : > { %v1823_v1 = vpop.eup %1822  ;;  %1842 = vpow2.f32 %v1524_v53  ;;  %v2721_v3 = vpop.f32.mrf.mxu1 }
 0x22e   : > { %v1825_v5 = vpop.eup %1824  ;;  %v2723_v8 = vmul.f32 %v1823_v1, %v1821_v60  ;;  %1844 = vtanh.f32 %v934_v0 }
 0x22f   : > { %v1072_v12 = vadd.f32 1.0, %v1825_v5  ;;  %v2725_v14 = vpop.f32.mrf.mxu1  ;;  %v1827_v15 = vpop.eup %1826 }
 0x231   : > { %v1829_v39 = vpop.eup %1828  ;;  %1846 = vrcp.f32 %v1072_v12  ;;  %v2728_v54 = vpop.f32.mrf.mxu1 }
 0x232   : > { %v1831_v61 = vpop.eup %1830  ;;  %v2730_v52 = vmul.f32 %v1829_v39, %v1827_v15  ;;  %1848 = vtanh.f32 %v940_v17  ;;  %v966_v15 = vadd.f32 %v2725_v14, %v2694_v59 }
 0x233   : > { %v1073_v47 = vadd.f32 1.0, %v1831_v61  ;;  %v971_v56 = vpop.f32.mrf.mxu1  ;;  %v1833_v63 = vpop.eup %1832 }
 0x234   : > { %v972_v5 = vadd.f32 %v971_v56, %v2694_v59 }
 0x235   : > { %v1835_v45 = vpop.eup %1834  ;;  %1850 = vrcp.f32 %v1073_v47  ;;  %v2733_v41 = vpop.f32.mrf.mxu1 }
 0x236   : > { %v1837_v49 = vpop.eup %1836  ;;  %v2735_v6 = vmul.f32 %v1835_v45, %v1833_v63  ;;  %1852 = vtanh.f32 %v946_v2  ;;  %v1527_v17 = vmul.f32 -1.442695, %v972_v5  ;;  %v960_v63 = vadd.f32 %v2718_v57, %v2694_v59 }
 0x237   : > { %v1074_v9 = vadd.f32 1.0, %v1837_v49  ;;  %v977_v11 = vpop.f32.mrf.mxu1  ;;  %v1839_v13 = vpop.eup %1838  ;;  %v1526_v2 = vmul.f32 -1.442695, %v966_v15 }
 0x238   : > { %v978_v0 = vadd.f32 %v977_v11, %v2694_v59  ;;  %v1525_v11 = vmul.f32 -1.442695, %v960_v63 }
 0x239   : > { %v1841_v20 = vpop.eup %1840  ;;  %1854 = vrcp.f32 %v1074_v9  ;;  %v2738_v23 = vpop.f32.mrf.mxu1 }
 0x23a   : > { %v1843_v25 = vpop.eup %1842  ;;  %v2740_v27 = vmul.f32 %v1841_v20, %v1839_v13  ;;  %1856 = vtanh.f32 %v952_v18  ;;  %v1528_v12 = vmul.f32 -1.442695, %v978_v0  ;;  %v982_v57 = vadd.f32 %v2738_v23, %v2703_v16 }
 0x23b   : > { %v1075_v30 = vadd.f32 1.0, %v1843_v25  ;;  %v983_v36 = vpop.f32.mrf.mxu1  ;;  %v1845_v32 = vpop.eup %1844 }
 0x23c   : > { %v984_v51 = vadd.f32 %v983_v36, %v2694_v59 }
 0x23d   : > { %1858 = vrcp.f32 %v1075_v30  ;;  %v987_v38 = vpop.f32.mrf.mxu1 }
 0x23e   : > { %v1847_v43 = vpop.eup %1846  ;;  %v1529_v1 = vmul.f32 -1.442695, %v984_v51  ;;  %v988_v18 = vadd.f32 %v987_v38, %v2703_v16 }
 0x23f   : > { %v989_v46 = vpop.f32.mrf.mxu1  ;;  %v2742_v50 = vmul.f32 %v1847_v43, %v1845_v32  ;;  %v1849_v55 = vpop.eup %1848  ;;  %v976_v32 = vadd.f32 %v2733_v41, %v2703_v16 }
 0x240   : > { %v990_v26 = vadd.f32 %v989_v46, %v2694_v59 }
 0x241   : > { %v993_v58 = vpop.f32.mrf.mxu1 }
 0x242   : > { %v1851_v62 = vpop.eup %1850  ;;  %v1530_v53 = vmul.f32 -1.442695, %v990_v26  ;;  %v994_v56 = vadd.f32 %v993_v58, %v2703_v16 }
 0x243   : > { %v995_v7 = vpop.f32.mrf.mxu1  ;;  %v2744_v10 = vmul.f32 %v1851_v62, %v1849_v55  ;;  %v1853_v21 = vpop.eup %1852  ;;  %v970_v62 = vadd.f32 %v2728_v54, %v2703_v16 }
 0x244   : > { %v996_v19 = vadd.f32 %v995_v7, %v2694_v59 }
 0x245   : > { %v999_v22 = vpop.f32.mrf.mxu1 }
 0x246   : > { %v1855_v24 = vpop.eup %1854  ;;  %v1531_v28 = vmul.f32 -1.442695, %v996_v19  ;;  %v1000_v61 = vadd.f32 %v999_v22, %v2703_v16  ;;  %v964_v22 = vadd.f32 %v2721_v3, %v2703_v16 }
 0x247   : > { %v1001_v29 = vpop.f32.mrf.mxu1  ;;  %v2748_v31 = vmul.f32 %v1855_v24, %v1853_v21  ;;  %v1857_v40 = vpop.eup %1856 }
 0x248   : > { %v1002_v33 = vadd.f32 %v1001_v29, %v2694_v59  ;;  %1860 = vpow2.f32 %v1531_v28  ;;  %v958_v29 = vadd.f32 %v2714_v48, %v2703_v16 }
 0x24a   : > { %v1859_v42 = vpop.eup %1858  ;;  %v1532_v44 = vmul.f32 -1.442695, %v1002_v33 }
 0x24b   : > { %v2752_v60 = vmul.f32 %v1859_v42, %v1857_v40 }
 0x24c   : > { %1862 = vpow2.f32 %v1532_v44 }
 0x24d   : > { %1864 = vpow2.f32 %v1530_v53 }
 0x24e   : > { %1866 = vpow2.f32 %v1529_v1 }
 0x24f   : > { %1868 = vpow2.f32 %v1528_v12 }
 0x250   : > { %1870 = vpow2.f32 %v1527_v17  ;;  %v2013_v17 = vmov 0  }
 0x251   : > { %1872 = vtanh.f32 %v1000_v61  ;;  %1810 = vset.pattern.permute.xlu0 %v2013_v17  ;;  %1811 = vset.pattern.permute.xlu1 %v2013_v17 }
 0x255   : > { %v1861_v39 = vpop.eup %1860 }
 0x256   : > { %v1082_v45 = vadd.f32 1.0, %v1861_v39 }
 0x259   : > { %v1863_v47 = vpop.eup %1862 }
 0x25a   : > { %v1083_v49 = vadd.f32 1.0, %v1863_v47  ;;  %v1865_v9 = vpop.eup %1864 }
 0x25b   : > { %v1081_v14 = vadd.f32 1.0, %v1865_v9  ;;  %v1867_v13 = vpop.eup %1866 }
 0x25c   : > { %1874 = vrcp.f32 %v1083_v49  ;;  %v1080_v20 = vadd.f32 1.0, %v1867_v13  ;;  %v1869_v59 = vpop.eup %1868 }
 0x25d   : > { %1876 = vpow2.f32 %v1526_v2  ;;  %v1079_v25 = vadd.f32 1.0, %v1869_v59  ;;  %v1871_v30 = vpop.eup %1870 }
 0x25e   : > { %1878 = vrcp.f32 %v1082_v45  ;;  %v1873_v36 = vpop.eup %1872  ;;  %v1078_v38 = vadd.f32 1.0, %v1871_v30 }
 0x25f   : > { %1880 = vtanh.f32 %v994_v56 }
 0x260   : > { %1882 = vpow2.f32 %v1525_v11 }
 0x261   : > { %1884 = vrcp.f32 %v1081_v14  ;;  %v1232_v14 = vld [vmem:[%s2202_s21] sm:$0x1] }
 0x262   : > { %1886 = vtanh.f32 %v988_v18 }
 0x263   : > { %1888 = vrcp.f32 %v1080_v20 }
 0x264   : > { %1890 = vtanh.f32 %v982_v57 }
 0x265   : > { %1892 = vrcp.f32 %v1079_v25  ;;  %v1240_v25 = vld [vmem:[%s2211_s0] sm:$0x1] }
 0x266   : > { %1894 = vtanh.f32 %v976_v32 }
 0x267   : > { %1896 = vrcp.f32 %v1078_v38 }
 0x268   : > { %1898 = vtanh.f32 %v970_v62 }
 0x269   : > { %v1875_v43 = vpop.eup %1874 }
 0x26a   : > { %v1877_v46 = vpop.eup %1876  ;;  %v1131_v55 = vmul.f32 %v1875_v43, %v1873_v36 }
 0x26b   : > { %v1879_v58 = vpop.eup %1878  ;;  %v1077_v19 = vadd.f32 1.0, %v1877_v46 }
 0x26c   : > { %1669 = vmatpush3.xpose.msra.mxu0 %v1131_v55  ;;  %v1881_v23 = vpop.eup %1880 }
 0x26d   : > { %1670 = vmatprep.subr.mxu0 %v2011_v34  ;;  %v1883_v7 = vpop.eup %1882  ;;  %v1130_v21 = vmul.f32 %v1881_v23, %v1879_v58  ;;  %1900 = vrcp.f32 %v1077_v19 }
 0x26e   : > { %v1885_v41 = vpop.eup %1884  ;;  %v1076_v26 = vadd.f32 1.0, %v1883_v7  ;;  %1902 = vtanh.f32 %v964_v22 }
 0x26f   : > { %v1887_v24 = vpop.eup %1886 }
 0x270   : > { %1671 = vmatpush3.xpose.msra.mxu0 %v1130_v21  ;;  %v1129_v54 = vmul.f32 %v1887_v24, %v1885_v41  ;;  %v1889_v28 = vpop.eup %1888  ;;  %1904 = vrcp.f32 %v1076_v26 }
 0x271   : > { %1672 = vmatprep.subr.mxu0 %v2011_v34  ;;  %v1891_v33 = vpop.eup %1890  ;;  %1906 = vtanh.f32 %v958_v29 }
 0x272   : > { %v1128_v40 = vmul.f32 %v1891_v33, %v1889_v28  ;;  %v1893_v3 = vpop.eup %1892 }
 0x273   : > { %v1895_v42 = vpop.eup %1894 }
 0x274   : > { %1673 = vmatpush3.xpose.msra.mxu0 %v1129_v54  ;;  %v1127_v44 = vmul.f32 %v1895_v42, %v1893_v3  ;;  %v1897_v51 = vpop.eup %1896 }
 0x275   : > { %1674 = vmatprep.subr.mxu0 %v2011_v34  ;;  %v1899_v53 = vpop.eup %1898 }
 0x276   : > { %v1126_v16 = vmul.f32 %v1899_v53, %v1897_v51 }
 0x278   : > { %1675 = vmatpush3.xpose.msra.mxu0 %v1128_v40 }
 0x279   : > { %1676 = vmatprep.subr.mxu0 %v2011_v34 }
 0x27a   : > { %v1901_v48 = vpop.eup %1900 }
 0x27b   : > { %v1903_v0 = vpop.eup %1902 }
 0x27c   : > { %1677 = vmatpush3.xpose.msra.mxu0 %v1127_v44  ;;  %v1125_v1 = vmul.f32 %v1903_v0, %v1901_v48 }
 0x27d   : > { %1678 = vmatprep.subr.mxu0 %v2011_v34  ;;  %v1905_v5 = vpop.eup %1904 }
 0x27e   : > { %v1907_v12 = vpop.eup %1906 }
 0x27f   : > { %v1124_v15 = vmul.f32 %v1907_v12, %v1905_v5 }
 0x280   : > { %1679 = vmatpush3.xpose.msra.mxu0 %v1126_v16 }
 0x281   : > { %1680 = vmatprep.subr.mxu0 %v2011_v34 }
 0x284   : > { %1681 = vmatpush3.xpose.msra.mxu0 %v1125_v1 }
 0x285   : > { %1682 = vmatprep.subr.mxu0 %v2011_v34 }
 0x288   : > { %1683 = vmatpush3.xpose.msra.mxu0 %v1124_v15 }
 0x289   : > { %1684 = vmatprep.subr.mxu0 %v2011_v34 }
 0x28c   : > { %1685 = vmatpush3.xpose.msra.mxu0 %v2752_v60 }
 0x28d   : > { %1686 = vmatprep.subr.mxu0 %v2011_v34 }
 0x290   : > { %1687 = vmatpush3.xpose.msra.mxu0 %v2748_v31 }
 0x291   : > { %1688 = vmatprep.subr.mxu0 %v2011_v34 }
 0x294   : > { %1689 = vmatpush3.xpose.msra.mxu0 %v2744_v10  ;;  %v1134_v10 = vstv %s1133_s19 }
 0x295   : > { %1690 = vmatprep.subr.mxu0 %v2011_v34 }
 0x298   : > { %1691 = vmatpush3.xpose.msra.mxu0 %v2742_v50  ;;  %v1132_v50 = vld [vmem:[%s2847_s5] sm:$0x1] }
 0x299   : > { %1692 = vmatprep.subr.mxu0 %v2011_v34 }
 0x29c   : > { %1693 = vmatpush3.xpose.msra.mxu0 %v2740_v27  ;;  %v1207_v27 = vand.u32 127, %v701_v35  ;;  %v1211_v35 = vld [vmem:[%s2197_s29] sm:$0x1] }
 0x29d   : > { %1694 = vmatprep.subr.mxu0 %v2011_v34 }
 0x2a0   : > { %1695 = vmatpush3.xpose.msra.mxu0 %v2735_v6  ;;  %v1208_v6 = vadd.s32 %v1207_v27, %v2449_v37 }
 0x2a1   : > { %1696 = vmatprep.subr.mxu0 %v2011_v34 }
 0x2a2   : > { %vm1209_vm2 = vcmp.lt.s32.totalorder %v1208_v6, 300 }
 0x2a4   : > { %1697 = vmatpush3.xpose.msra.mxu0 %v2730_v52 }
 0x2a5   : > { %1698 = vmatprep.subr.mxu0 %v2011_v34 }
 0x2a8   : > { %1699 = vmatpush3.xpose.msra.mxu0 %v2723_v8 }
 0x2ab   : > { %1701 = vmatmul.mubr.f32.vlgmr.msra.gmra.mxu0 %v1132_v50 }
 0x36b   : > { %v1201_v31 = vpop.f32.mrf.mxu0 }
 0x36c   : > { %v1202_v52 = vadd.f32 %v1201_v31, %v1134_v10 }
 0x36d   : > { %v1702_v34 = vpop.f32.mrf.mxu0 }
 0x36e   : > { %1205 = vst [vmem:[%s442_s15] sm:$0x1] %v1202_v52  ;;  %v1210_v8 = vsel %vm1209_vm2, %v1202_v52, -1e+30 }
 0x36f   : > { %v1213_v60 = vsel %vm1212_vm3, %v1210_v8, -inf }
 0x370   : > { %1214 = vmax.xlane.f32.xlu0 %v1213_v60 }
 0x3f9   : > { %v1215_v37 = vpop.xlane.xlu0 %1214 }
 0x3fa   : > { %v1216_v39 = vmax.f32 %v1211_v35, %v1215_v37 }
 0x3fc   : > { %v1217_v61 = vsub.f32 %v1211_v35, %v1216_v39  ;;  %1323 = vst.msk [vmem:[%s2197_s29] sm:$0x1] %vm1238_vm4, %v1216_v39  ;;  %1222 = vperm.xlu0 %1810, %v1216_v39  }
 0x3fe   : > { %v1218_v9 = vmul.f32 1.442695, %v1217_v61 }
 0x477   : > { %v1223_v47 = vpop.permute.xlu0 %1222 }
 0x478   : > { %v1228_v63 = vrot.slane %v1223_v47, %v2699_v4 }
 0x47a   : > { %v1229_v2 = vsub.f32 %v1210_v8, %v1228_v63 }
 0x47c   : > { %v1230_v45 = vmul.f32 1.442695, %v1229_v2 }
 0x47e   : > { %1908 = vpow2.f32 %v1230_v45 }
 0x47f   : > { %1910 = vpow2.f32 %v1218_v9 }
 0x48b   : > { %v1909_v49 = vpop.eup %1908 }
 0x48c   : > { %1736 = vmatmul.mubr.f32.vlgmr.msra.gmra.mxu1 %v1909_v49  ;;  %v1234_v56 = vsel %vm1212_vm3, %v1909_v49, 0.0  ;;  %v1911_v11 = vpop.eup %1910 }
 0x48d   : > { %1235 = vadd.xlane.f32.xlu1 %v1234_v56  ;;  %v1233_v13 = vmul.f32 %v1911_v11, %v1232_v14 }
 0x49e   : > { %1243 = vperm.xlu1 %1811, %v1911_v11  }
 0x516   : > { %v1236_v18 = vpop.xlane.xlu1 %1235 }
 0x517   : > { %v1237_v20 = vadd.f32 %v1236_v18, %v1233_v13 }
 0x519   : > { %1239 = vst.msk [vmem:[%s2202_s21] sm:$0x1] %vm1238_vm4, %v1237_v20 }
 0x51a   : > { %v1244_v59 = vpop.permute.xlu1 %1243 }
 0x51b   : > { %v1249_v57 = vrot.slane %v1244_v59, %v2699_v4 }
 0x51d   : > { %v1250_v30 = vmul.f32 %v1249_v57, %v1240_v25 }
 0x54c   : > { %v1317_v36 = vpop.f32.mrf.mxu1 }
 0x54d   : > { %v1321_v32 = vadd.f32 %v1317_v36, %v1250_v30 }
 0x54e   : > { %v1737_v43 = vpop.f32.mrf.mxu1 }
 0x54f   : > { %1322 = vst [vmem:[%s2211_s0] sm:$0x1] %v1321_v32 }
 0x550 PF: > { %s25_s22 = sadd.s32 1, %s2004_s22   ;;  %s2862_s19 = sld [smem:[#allocation6_spill]] }
 0x551   : > { %p22_p5 = scmp.ge.s32.totalorder %s25_s22, 6   ;;  %s2863_s14 = sld [smem:[#allocation7_spill]] }
 0x552   : > { %s2864_s21 = sld [smem:[#allocation8_spill]]  ;;  %s2865_s15 = smov %s1980_s16 }
 0x553   : > { %s2866_s16 = smov %s1984_s17  ;;  %s2867_s17 = smov %s2135_s12 }
 0x554   : > { %s2868_s18 = smov %s1996_s20  ;;  %24 = sbr.rel (!%p22_p5) target bundleno = 8 (0x8), region = 132 }
 0x557   : > { %s2869_s20 = smov %s2863_s14 }
 0x559   :  { %1383 = vsyncpa [#allocation4], 1 }
 0x55a   :  { %1385 = vsyncpa [#allocation4 + $0x1], 1 }

</bundles_post_ra>
